<compile_context>
chip_gen: v7x
topology: tpu7x:2x2x1
jax: 0.10.0
libtpu: 0.0.40
codegen_flags: <defaults>
</compile_context>

<pallas_src>
import functools
import math

import jax
import jax.numpy as jnp
from jax.experimental import pallas as pl
from jax.experimental.pallas import tpu as pltpu


def _round_up(a: int, b: int) -> int:
    return (a + b - 1) // b * b


def _choose_batch_tile(n, cin, l, itemsize, max_tb=64, in_block_budget=8 << 20):
    """Samples per grid step: multiple of 8 (so the (TB, out_dim) output block
    tiles), capped so the double-buffered input block stays far inside even
    v7x's 64 MiB VMEM, and small enough to leave >= 2 grid steps when the
    batch allows (v7x has 2 TensorCores; a 1-step grid would idle one)."""
    n8 = _round_up(n, 8)
    if n8 < 16:
        return n8
    per_sample = max(1, cin * l * itemsize)
    cap = max(8, (in_block_budget // (2 * per_sample)) // 8 * 8)   # 2x: double buffer
    half = max(8, (n8 // 2) // 8 * 8)                              # >= 2 grid steps
    return int(min(max_tb, cap, half))


# --------------------------------------------------------------------------
# Fused kernel: all conv layers + ReLU + final global avg/max pool, TB samples.
# --------------------------------------------------------------------------
def _fused_conv_kernel(x_ref, *refs, kernel_sizes, out_lens, avg_pool, tb,
                       compute_dtype):
    """refs = (w0, b0, w1, b1, ..., o_ref).

    x_ref : (TB, Cin, L)          VMEM, NCW (L on lanes)
    w_i   : (K_i, Cout_i, Cin_i)  VMEM, per-tap weights, compute_dtype (bf16)
    b_i   : (Cout_i, 1)           VMEM, f32
    o_ref : (TB, out_dim)         VMEM, pooled output, f32
    """
    o_ref = refs[-1]
    wb = refs[:-1]
    n_layers = len(kernel_sizes)

    # Hoist weight loads and bias broadcasts out of the per-sample loop
    # (JAX does not CSE broadcast_in_dim across loop iterations).
    w_taps = []   # w_taps[li][k] : (Cout, Cin), compute_dtype
    bias_b = []   # bias_b[li]    : (Cout, L_out_li), f32
    for li, K in enumerate(kernel_sizes):
        w_ref = wb[2 * li]
        b_ref = wb[2 * li + 1]
        cout = w_ref.shape[1]
        w_taps.append([w_ref[k] for k in range(K)])
        bias_b.append(jnp.broadcast_to(b_ref[...].astype(jnp.float32),
                                       (cout, out_lens[li])))

    def sample_body(bi, carry):
        x = x_ref[bi]                                      # (Cin, L_cur), f32
        for li, K in enumerate(kernel_sizes):
            l_out = out_lens[li]
            xb = x.astype(compute_dtype)                   # bf16 MXU operand
            acc = bias_b[li]                               # f32 accumulator (bias)
            for k in range(K):                             # K tap-accumulated matmuls
                acc = acc + jnp.dot(w_taps[li][k], xb[:, k:k + l_out],
                                    preferred_element_type=jnp.float32)
            if li < n_layers - 1:
                x = jnp.maximum(acc, 0.0)                  # ReLU in f32
            else:
                # Final layer: no ReLU, global pool over length (lane reduce).
                if avg_pool:
                    pooled = jnp.mean(acc, axis=1)         # (out_dim,)
                else:
                    pooled = jnp.max(acc, axis=1)
                o_ref[bi, :] = pooled.astype(o_ref.dtype)
        return carry

    jax.lax.fori_loop(0, tb, sample_body, 0, unroll=min(tb, 8))


# --------------------------------------------------------------------------
# Parameter packing (done ONCE, not per forward call).
# --------------------------------------------------------------------------
def pack_params(params, compute_dtype=jnp.bfloat16):
    """PyTorch-style [(w (Cout, Cin, K), b (Cout,)), ...] ->
       [(w_taps (K, Cout, Cin) in compute_dtype, b (Cout, 1) f32, K), ...]."""
    packed = []
    for w_oik, b in params:
        cout, cin, k = w_oik.shape
        w_taps = jnp.transpose(w_oik, (2, 0, 1)).astype(compute_dtype)  # (K, Cout, Cin)
        packed.append((w_taps, b.reshape(cout, 1).astype(jnp.float32), int(k)))
    return packed


# --------------------------------------------------------------------------
# Forward pass wrapper.
# --------------------------------------------------------------------------
def conv_network_forward(x_ncl, packed_params, *, avg_pool=True,
                         max_batch_tile=64, compute_dtype=jnp.bfloat16):
    """Pallas equivalent of ConvNetwork.forward.

    x_ncl: (N, C_in, L) in PyTorch NCW layout (no host-side transpose needed).
    Returns (N, out_dim, 1), matching the PyTorch module.
    """
    N, cin, L = x_ncl.shape

    # Static per-layer output lengths (guard against too-short inputs).
    out_lens = []
    l_cur = L
    for _, _, K in packed_params:
        l_cur = l_cur - K + 1
        if l_cur <= 0:
            raise ValueError(
                f"Input length {L} too short for kernel sizes "
                f"{[p[2] for p in packed_params]} (non-positive conv output).")
        out_lens.append(l_cur)
    out_lens = tuple(out_lens)
    kernel_sizes = tuple(p[2] for p in packed_params)
    out_dim = packed_params[-1][0].shape[1]

    # ---- batch tiling ----
    itemsize = jnp.dtype(x_ncl.dtype).itemsize
    tb = _choose_batch_tile(N, cin, L, itemsize, max_tb=max_batch_tile)
    n_pad = _round_up(N, tb)
    if n_pad != N:
        x_ncl = jnp.pad(x_ncl, ((0, n_pad - N), (0, 0), (0, 0)))
    grid = (n_pad // tb,)

    # ---- specs ----
    in_specs = [pl.BlockSpec((tb, cin, L), lambda i: (i, 0, 0))]
    flat_args = [x_ncl]
    for w_taps, b2, _ in packed_params:
        # Constant index maps -> weights/biases stay resident, never re-fetched.
        in_specs.append(pl.BlockSpec(w_taps.shape, lambda i: (0, 0, 0)))
        in_specs.append(pl.BlockSpec(b2.shape, lambda i: (0, 0)))
        flat_args.append(w_taps)
        flat_args.append(b2)

    kernel = functools.partial(
        _fused_conv_kernel, kernel_sizes=kernel_sizes, out_lens=out_lens,
        avg_pool=avg_pool, tb=tb, compute_dtype=compute_dtype)

    # Advisory cost estimate so XLA schedules producers/consumers around us.
    flops = 0
    bytes_accessed = x_ncl.size * itemsize + n_pad * out_dim * 4
    for (w_taps, b2, K), l_out in zip(packed_params, out_lens):
        k_, cout_, cin_ = w_taps.shape
        flops += 2 * n_pad * l_out * k_ * cin_ * cout_
        bytes_accessed += (w_taps.size * jnp.dtype(compute_dtype).itemsize
                           + b2.size * 4)

    out = pl.pallas_call(
        kernel,
        out_shape=jax.ShapeDtypeStruct((n_pad, out_dim), jnp.float32),
        grid=grid,
        in_specs=in_specs,
        out_specs=pl.BlockSpec((tb, out_dim), lambda i: (i, 0)),
        compiler_params=pltpu.CompilerParams(
            dimension_semantics=("parallel",),
            # 48 MiB: above the 16/32 MiB scoped defaults (lets larger TB tiles
            # through on v5e/v6e) while leaving headroom inside v7x's 64 MiB VMEM.
            vmem_limit_bytes=48 * 1024 * 1024,
        ),
        cost_estimate=pl.CostEstimate(flops=int(flops), transcendentals=0,
                                      bytes_accessed=int(bytes_accessed)),
    )(*flat_args)

    # Drop batch padding; (N, out_dim) -> (N, out_dim, 1) like the PyTorch module.
    return out[:N].reshape(N, out_dim, 1)


# --------------------------------------------------------------------------
# Init + pure-JAX reference (torch.nn.Conv1d semantics).
# --------------------------------------------------------------------------
def init_params(key, inp_dim, channels, out_dim, kernel_sizes):
    """Deterministic PyTorch-Conv1d-style uniform init; weights are (Cout, Cin, K)."""
    dims = [inp_dim] + list(channels) + [out_dim]
    params = []
    for cin, cout, k in zip(dims[:-1], dims[1:], kernel_sizes):
        key, k1, k2 = jax.random.split(key, 3)
        bound = 1.0 / math.sqrt(cin * k)
        w = jax.random.uniform(k1, (cout, cin, k), jnp.float32, -bound, bound)
        b = jax.random.uniform(k2, (cout,), jnp.float32, -bound, bound)
        params.append((w, b))
    return params


def reference_forward(x_ncl, params, *, avg_pool=True):
    x = x_ncl
    n_layers = len(params)
    for i, (w, b) in enumerate(params):
        x = jax.lax.conv_general_dilated(
            x, w, window_strides=(1,), padding="VALID",
            dimension_numbers=("NCH", "OIH", "NCH"))
        x = x + b[None, :, None]
        if i < n_layers - 1:
            x = jnp.maximum(x, 0.0)
    if avg_pool:
        return jnp.mean(x, axis=-1, keepdims=True)
    return jnp.max(x, axis=-1, keepdims=True)


if __name__ == "__main__":
    key = jax.random.PRNGKey(0)
    N, inp_dim, L = 16, 4, 16
    channels = [8, 8]
    out_dim = 6
    kernel_sizes = [3, 3, 3]          # len(channels) + 1 kernel sizes

    kx, kp = jax.random.split(key)
    x = jax.random.normal(kx, (N, inp_dim, L), jnp.float32)
    params = init_params(kp, inp_dim, channels, out_dim, kernel_sizes)
    packed = pack_params(params)      # pre-pack per-tap bf16 weights once

    fwd_avg = jax.jit(lambda xx: conv_network_forward(xx, packed, avg_pool=True))
    fwd_max = jax.jit(lambda xx: conv_network_forward(xx, packed, avg_pool=False))

    out = jax.block_until_ready(fwd_avg(x))
    assert out.shape == (N, out_dim, 1), out.shape
    ref = reference_forward(x, params, avg_pool=True)
    # bf16 MXU operands vs f32 reference -> loosened tolerance (per review).
    assert jnp.allclose(out, ref, atol=2e-2, rtol=2e-2), (
        "avg mismatch", float(jnp.max(jnp.abs(out - ref))))

    out_max = jax.block_until_ready(fwd_max(x))
    ref_max = reference_forward(x, params, avg_pool=False)
    assert jnp.allclose(out_max, ref_max, atol=2e-2, rtol=2e-2), (
        "max mismatch", float(jnp.max(jnp.abs(out_max - ref_max))))

    print("KERNEL_OK")
</pallas_src>

<mosaic_0001>
module attributes {stable_mosaic.version = 11 : i64} {
  func.func @_fused_conv_kernel(%arg0: i32, %arg1: memref<8x4x16xf32, #tpu.memory_space<vmem>>, %arg2: memref<3x8x4xbf16, #tpu.memory_space<vmem>>, %arg3: memref<8x1xf32, #tpu.memory_space<vmem>>, %arg4: memref<3x8x8xbf16, #tpu.memory_space<vmem>>, %arg5: memref<8x1xf32, #tpu.memory_space<vmem>>, %arg6: memref<3x6x8xbf16, #tpu.memory_space<vmem>>, %arg7: memref<6x1xf32, #tpu.memory_space<vmem>>, %arg8: memref<8x6xf32, #tpu.memory_space<vmem>>) attributes {dimension_semantics = [#tpu.dimension_semantics<parallel>], iteration_bounds = array<i64: 2>, scalar_prefetch = 0 : i64, scratch_operands = 0 : i64, tpu.core_type = #tpu.core_type<tc>, window_params = [{transform_indices = @transform_0, window_bounds = array<i64: 8, 4, 16>}, {pipeline_mode = #tpu.pipeline_mode<synchronous>, transform_indices = @transform_1, window_bounds = array<i64: 3, 8, 4>}, {pipeline_mode = #tpu.pipeline_mode<synchronous>, transform_indices = @transform_2, window_bounds = array<i64: 8, 1>}, {pipeline_mode = #tpu.pipeline_mode<synchronous>, transform_indices = @transform_3, window_bounds = array<i64: 3, 8, 8>}, {pipeline_mode = #tpu.pipeline_mode<synchronous>, transform_indices = @transform_4, window_bounds = array<i64: 8, 1>}, {pipeline_mode = #tpu.pipeline_mode<synchronous>, transform_indices = @transform_5, window_bounds = array<i64: 3, 6, 8>}, {pipeline_mode = #tpu.pipeline_mode<synchronous>, transform_indices = @transform_6, window_bounds = array<i64: 6, 1>}, {transform_indices = @transform_7, window_bounds = array<i64: 8, 6>}]} {
    %c0 = arith.constant 0 : index
    %c0_0 = arith.constant 0 : index
    %c0_1 = arith.constant 0 : index
    %0 = vector.load %arg2[%c0, %c0_0, %c0_1] : memref<3x8x4xbf16, #tpu.memory_space<vmem>>, vector<1x8x4xbf16>
    %1 = vector.shape_cast %0 : vector<1x8x4xbf16> to vector<8x4xbf16>
    %c1 = arith.constant 1 : index
    %c0_2 = arith.constant 0 : index
    %c0_3 = arith.constant 0 : index
    %2 = vector.load %arg2[%c1, %c0_2, %c0_3] : memref<3x8x4xbf16, #tpu.memory_space<vmem>>, vector<1x8x4xbf16>
    %3 = vector.shape_cast %2 : vector<1x8x4xbf16> to vector<8x4xbf16>
    %c2 = arith.constant 2 : index
    %c0_4 = arith.constant 0 : index
    %c0_5 = arith.constant 0 : index
    %4 = vector.load %arg2[%c2, %c0_4, %c0_5] : memref<3x8x4xbf16, #tpu.memory_space<vmem>>, vector<1x8x4xbf16>
    %5 = vector.shape_cast %4 : vector<1x8x4xbf16> to vector<8x4xbf16>
    %c0_6 = arith.constant 0 : index
    %c0_7 = arith.constant 0 : index
    %6 = vector.load %arg3[%c0_6, %c0_7] : memref<8x1xf32, #tpu.memory_space<vmem>>, vector<8x1xf32>
    %7 = vector.shape_cast %6 : vector<8x1xf32> to vector<8x1xf32>
    %8 = vector.broadcast %7 : vector<8x1xf32> to vector<8x14xf32>
    %c0_8 = arith.constant 0 : index
    %c0_9 = arith.constant 0 : index
    %c0_10 = arith.constant 0 : index
    %9 = vector.load %arg4[%c0_8, %c0_9, %c0_10] : memref<3x8x8xbf16, #tpu.memory_space<vmem>>, vector<1x8x8xbf16>
    %10 = vector.shape_cast %9 : vector<1x8x8xbf16> to vector<8x8xbf16>
    %c1_11 = arith.constant 1 : index
    %c0_12 = arith.constant 0 : index
    %c0_13 = arith.constant 0 : index
    %11 = vector.load %arg4[%c1_11, %c0_12, %c0_13] : memref<3x8x8xbf16, #tpu.memory_space<vmem>>, vector<1x8x8xbf16>
    %12 = vector.shape_cast %11 : vector<1x8x8xbf16> to vector<8x8xbf16>
    %c2_14 = arith.constant 2 : index
    %c0_15 = arith.constant 0 : index
    %c0_16 = arith.constant 0 : index
    %13 = vector.load %arg4[%c2_14, %c0_15, %c0_16] : memref<3x8x8xbf16, #tpu.memory_space<vmem>>, vector<1x8x8xbf16>
    %14 = vector.shape_cast %13 : vector<1x8x8xbf16> to vector<8x8xbf16>
    %c0_17 = arith.constant 0 : index
    %c0_18 = arith.constant 0 : index
    %15 = vector.load %arg5[%c0_17, %c0_18] : memref<8x1xf32, #tpu.memory_space<vmem>>, vector<8x1xf32>
    %16 = vector.shape_cast %15 : vector<8x1xf32> to vector<8x1xf32>
    %17 = vector.broadcast %16 : vector<8x1xf32> to vector<8x12xf32>
    %c0_19 = arith.constant 0 : index
    %c0_20 = arith.constant 0 : index
    %c0_21 = arith.constant 0 : index
    %18 = vector.load %arg6[%c0_19, %c0_20, %c0_21] : memref<3x6x8xbf16, #tpu.memory_space<vmem>>, vector<1x6x8xbf16>
    %19 = vector.shape_cast %18 : vector<1x6x8xbf16> to vector<6x8xbf16>
    %c1_22 = arith.constant 1 : index
    %c0_23 = arith.constant 0 : index
    %c0_24 = arith.constant 0 : index
    %20 = vector.load %arg6[%c1_22, %c0_23, %c0_24] : memref<3x6x8xbf16, #tpu.memory_space<vmem>>, vector<1x6x8xbf16>
    %21 = vector.shape_cast %20 : vector<1x6x8xbf16> to vector<6x8xbf16>
    %c2_25 = arith.constant 2 : index
    %c0_26 = arith.constant 0 : index
    %c0_27 = arith.constant 0 : index
    %22 = vector.load %arg6[%c2_25, %c0_26, %c0_27] : memref<3x6x8xbf16, #tpu.memory_space<vmem>>, vector<1x6x8xbf16>
    %23 = vector.shape_cast %22 : vector<1x6x8xbf16> to vector<6x8xbf16>
    %c0_28 = arith.constant 0 : index
    %c0_29 = arith.constant 0 : index
    %24 = vector.load %arg7[%c0_28, %c0_29] : memref<6x1xf32, #tpu.memory_space<vmem>>, vector<6x1xf32>
    %25 = vector.shape_cast %24 : vector<6x1xf32> to vector<6x1xf32>
    %26 = vector.broadcast %25 : vector<6x1xf32> to vector<6x10xf32>
    %c0_i32 = arith.constant 0 : i32
    %27 = arith.index_cast %c0_i32 : i32 to index
    %c0_30 = arith.constant 0 : index
    %c0_31 = arith.constant 0 : index
    %28 = vector.load %arg1[%27, %c0_30, %c0_31] : memref<8x4x16xf32, #tpu.memory_space<vmem>>, vector<1x4x16xf32>
    %29 = vector.shape_cast %28 : vector<1x4x16xf32> to vector<4x16xf32>
    %30 = arith.truncf %29 : vector<4x16xf32> to vector<4x16xbf16>
    %31 = vector.extract_strided_slice %30 {offsets = [0, 0], sizes = [4, 14], strides = [1, 1]} : vector<4x16xbf16> to vector<4x14xbf16>
    %cst = arith.constant dense<0.000000e+00> : vector<8x14xf32>
    %32 = tpu.matmul %1, %31, %cst {dimension_numbers = #tpu.dot_dimension_numbers<[1], [0], [0], [1], [0, 0, 1, 1], [], []>} : vector<8x4xbf16>, vector<4x14xbf16>, vector<8x14xf32> -> vector<8x14xf32>
    %33 = arith.addf %8, %32 : vector<8x14xf32>
    %34 = vector.extract_strided_slice %30 {offsets = [0, 1], sizes = [4, 14], strides = [1, 1]} : vector<4x16xbf16> to vector<4x14xbf16>
    %cst_32 = arith.constant dense<0.000000e+00> : vector<8x14xf32>
    %35 = tpu.matmul %3, %34, %cst_32 {dimension_numbers = #tpu.dot_dimension_numbers<[1], [0], [0], [1], [0, 0, 1, 1], [], []>} : vector<8x4xbf16>, vector<4x14xbf16>, vector<8x14xf32> -> vector<8x14xf32>
    %36 = arith.addf %33, %35 : vector<8x14xf32>
    %37 = vector.extract_strided_slice %30 {offsets = [0, 2], sizes = [4, 14], strides = [1, 1]} : vector<4x16xbf16> to vector<4x14xbf16>
    %cst_33 = arith.constant dense<0.000000e+00> : vector<8x14xf32>
    %38 = tpu.matmul %5, %37, %cst_33 {dimension_numbers = #tpu.dot_dimension_numbers<[1], [0], [0], [1], [0, 0, 1, 1], [], []>} : vector<8x4xbf16>, vector<4x14xbf16>, vector<8x14xf32> -> vector<8x14xf32>
    %39 = arith.addf %36, %38 : vector<8x14xf32>
    %cst_34 = arith.constant 0.000000e+00 : f32
    %40 = vector.broadcast %cst_34 : f32 to vector<8x14xf32>
    %41 = arith.maximumf %39, %40 : vector<8x14xf32>
    %42 = arith.truncf %41 : vector<8x14xf32> to vector<8x14xbf16>
    %43 = vector.extract_strided_slice %42 {offsets = [0, 0], sizes = [8, 12], strides = [1, 1]} : vector<8x14xbf16> to vector<8x12xbf16>
    %cst_35 = arith.constant dense<0.000000e+00> : vector<8x12xf32>
    %44 = tpu.matmul %10, %43, %cst_35 {dimension_numbers = #tpu.dot_dimension_numbers<[1], [0], [0], [1], [0, 0, 1, 1], [], []>} : vector<8x8xbf16>, vector<8x12xbf16>, vector<8x12xf32> -> vector<8x12xf32>
    %45 = arith.addf %17, %44 : vector<8x12xf32>
    %46 = vector.extract_strided_slice %42 {offsets = [0, 1], sizes = [8, 12], strides = [1, 1]} : vector<8x14xbf16> to vector<8x12xbf16>
    %cst_36 = arith.constant dense<0.000000e+00> : vector<8x12xf32>
    %47 = tpu.matmul %12, %46, %cst_36 {dimension_numbers = #tpu.dot_dimension_numbers<[1], [0], [0], [1], [0, 0, 1, 1], [], []>} : vector<8x8xbf16>, vector<8x12xbf16>, vector<8x12xf32> -> vector<8x12xf32>
    %48 = arith.addf %45, %47 : vector<8x12xf32>
    %49 = vector.extract_strided_slice %42 {offsets = [0, 2], sizes = [8, 12], strides = [1, 1]} : vector<8x14xbf16> to vector<8x12xbf16>
    %cst_37 = arith.constant dense<0.000000e+00> : vector<8x12xf32>
    %50 = tpu.matmul %14, %49, %cst_37 {dimension_numbers = #tpu.dot_dimension_numbers<[1], [0], [0], [1], [0, 0, 1, 1], [], []>} : vector<8x8xbf16>, vector<8x12xbf16>, vector<8x12xf32> -> vector<8x12xf32>
    %51 = arith.addf %48, %50 : vector<8x12xf32>
    %cst_38 = arith.constant 0.000000e+00 : f32
    %52 = vector.broadcast %cst_38 : f32 to vector<8x12xf32>
    %53 = arith.maximumf %51, %52 : vector<8x12xf32>
    %54 = arith.truncf %53 : vector<8x12xf32> to vector<8x12xbf16>
    %55 = vector.extract_strided_slice %54 {offsets = [0, 0], sizes = [8, 10], strides = [1, 1]} : vector<8x12xbf16> to vector<8x10xbf16>
    %cst_39 = arith.constant dense<0.000000e+00> : vector<6x10xf32>
    %56 = tpu.matmul %19, %55, %cst_39 {dimension_numbers = #tpu.dot_dimension_numbers<[1], [0], [0], [1], [0, 0, 1, 1], [], []>} : vector<6x8xbf16>, vector<8x10xbf16>, vector<6x10xf32> -> vector<6x10xf32>
    %57 = arith.addf %26, %56 : vector<6x10xf32>
    %58 = vector.extract_strided_slice %54 {offsets = [0, 1], sizes = [8, 10], strides = [1, 1]} : vector<8x12xbf16> to vector<8x10xbf16>
    %cst_40 = arith.constant dense<0.000000e+00> : vector<6x10xf32>
    %59 = tpu.matmul %21, %58, %cst_40 {dimension_numbers = #tpu.dot_dimension_numbers<[1], [0], [0], [1], [0, 0, 1, 1], [], []>} : vector<6x8xbf16>, vector<8x10xbf16>, vector<6x10xf32> -> vector<6x10xf32>
    %60 = arith.addf %57, %59 : vector<6x10xf32>
    %61 = vector.extract_strided_slice %54 {offsets = [0, 2], sizes = [8, 10], strides = [1, 1]} : vector<8x12xbf16> to vector<8x10xbf16>
    %cst_41 = arith.constant dense<0.000000e+00> : vector<6x10xf32>
    %62 = tpu.matmul %23, %61, %cst_41 {dimension_numbers = #tpu.dot_dimension_numbers<[1], [0], [0], [1], [0, 0, 1, 1], [], []>} : vector<6x8xbf16>, vector<8x10xbf16>, vector<6x10xf32> -> vector<6x10xf32>
    %63 = arith.addf %60, %62 : vector<6x10xf32>
    %cst_42 = arith.constant dense<0.000000e+00> : vector<6xf32>
    %64 = vector.multi_reduction <add>, %63, %cst_42 [1] : vector<6x10xf32> to vector<6xf32>
    %cst_43 = arith.constant 1.000000e+01 : f32
    %65 = vector.broadcast %cst_43 : f32 to vector<6xf32>
    %66 = arith.divf %64, %65 : vector<6xf32>
    %67 = arith.index_cast %c0_i32 : i32 to index
    %c0_44 = arith.constant 0 : index
    %68 = vector.load %arg8[%67, %c0_44] : memref<8x6xf32, #tpu.memory_space<vmem>>, vector<1x6xf32>
    %69 = vector.shape_cast %68 : vector<1x6xf32> to vector<6xf32>
    %70 = vector.shape_cast %66 : vector<6xf32> to vector<1x6xf32>
    tpu.vector_store %arg8[%67, %c0_44], %70 {strides = array<i32>} : memref<8x6xf32, #tpu.memory_space<vmem>>, vector<1x6xf32>,
    %c1_i32 = arith.constant 1 : i32
    %71 = arith.index_cast %c1_i32 : i32 to index
    %c0_45 = arith.constant 0 : index
    %c0_46 = arith.constant 0 : index
    %72 = vector.load %arg1[%71, %c0_45, %c0_46] : memref<8x4x16xf32, #tpu.memory_space<vmem>>, vector<1x4x16xf32>
    %73 = vector.shape_cast %72 : vector<1x4x16xf32> to vector<4x16xf32>
    %74 = arith.truncf %73 : vector<4x16xf32> to vector<4x16xbf16>
    %75 = vector.extract_strided_slice %74 {offsets = [0, 0], sizes = [4, 14], strides = [1, 1]} : vector<4x16xbf16> to vector<4x14xbf16>
    %cst_47 = arith.constant dense<0.000000e+00> : vector<8x14xf32>
    %76 = tpu.matmul %1, %75, %cst_47 {dimension_numbers = #tpu.dot_dimension_numbers<[1], [0], [0], [1], [0, 0, 1, 1], [], []>} : vector<8x4xbf16>, vector<4x14xbf16>, vector<8x14xf32> -> vector<8x14xf32>
    %77 = arith.addf %8, %76 : vector<8x14xf32>
    %78 = vector.extract_strided_slice %74 {offsets = [0, 1], sizes = [4, 14], strides = [1, 1]} : vector<4x16xbf16> to vector<4x14xbf16>
    %cst_48 = arith.constant dense<0.000000e+00> : vector<8x14xf32>
    %79 = tpu.matmul %3, %78, %cst_48 {dimension_numbers = #tpu.dot_dimension_numbers<[1], [0], [0], [1], [0, 0, 1, 1], [], []>} : vector<8x4xbf16>, vector<4x14xbf16>, vector<8x14xf32> -> vector<8x14xf32>
    %80 = arith.addf %77, %79 : vector<8x14xf32>
    %81 = vector.extract_strided_slice %74 {offsets = [0, 2], sizes = [4, 14], strides = [1, 1]} : vector<4x16xbf16> to vector<4x14xbf16>
    %cst_49 = arith.constant dense<0.000000e+00> : vector<8x14xf32>
    %82 = tpu.matmul %5, %81, %cst_49 {dimension_numbers = #tpu.dot_dimension_numbers<[1], [0], [0], [1], [0, 0, 1, 1], [], []>} : vector<8x4xbf16>, vector<4x14xbf16>, vector<8x14xf32> -> vector<8x14xf32>
    %83 = arith.addf %80, %82 : vector<8x14xf32>
    %cst_50 = arith.constant 0.000000e+00 : f32
    %84 = vector.broadcast %cst_50 : f32 to vector<8x14xf32>
    %85 = arith.maximumf %83, %84 : vector<8x14xf32>
    %86 = arith.truncf %85 : vector<8x14xf32> to vector<8x14xbf16>
    %87 = vector.extract_strided_slice %86 {offsets = [0, 0], sizes = [8, 12], strides = [1, 1]} : vector<8x14xbf16> to vector<8x12xbf16>
    %cst_51 = arith.constant dense<0.000000e+00> : vector<8x12xf32>
    %88 = tpu.matmul %10, %87, %cst_51 {dimension_numbers = #tpu.dot_dimension_numbers<[1], [0], [0], [1], [0, 0, 1, 1], [], []>} : vector<8x8xbf16>, vector<8x12xbf16>, vector<8x12xf32> -> vector<8x12xf32>
    %89 = arith.addf %17, %88 : vector<8x12xf32>
    %90 = vector.extract_strided_slice %86 {offsets = [0, 1], sizes = [8, 12], strides = [1, 1]} : vector<8x14xbf16> to vector<8x12xbf16>
    %cst_52 = arith.constant dense<0.000000e+00> : vector<8x12xf32>
    %91 = tpu.matmul %12, %90, %cst_52 {dimension_numbers = #tpu.dot_dimension_numbers<[1], [0], [0], [1], [0, 0, 1, 1], [], []>} : vector<8x8xbf16>, vector<8x12xbf16>, vector<8x12xf32> -> vector<8x12xf32>
    %92 = arith.addf %89, %91 : vector<8x12xf32>
    %93 = vector.extract_strided_slice %86 {offsets = [0, 2], sizes = [8, 12], strides = [1, 1]} : vector<8x14xbf16> to vector<8x12xbf16>
    %cst_53 = arith.constant dense<0.000000e+00> : vector<8x12xf32>
    %94 = tpu.matmul %14, %93, %cst_53 {dimension_numbers = #tpu.dot_dimension_numbers<[1], [0], [0], [1], [0, 0, 1, 1], [], []>} : vector<8x8xbf16>, vector<8x12xbf16>, vector<8x12xf32> -> vector<8x12xf32>
    %95 = arith.addf %92, %94 : vector<8x12xf32>
    %cst_54 = arith.constant 0.000000e+00 : f32
    %96 = vector.broadcast %cst_54 : f32 to vector<8x12xf32>
    %97 = arith.maximumf %95, %96 : vector<8x12xf32>
    %98 = arith.truncf %97 : vector<8x12xf32> to vector<8x12xbf16>
    %99 = vector.extract_strided_slice %98 {offsets = [0, 0], sizes = [8, 10], strides = [1, 1]} : vector<8x12xbf16> to vector<8x10xbf16>
    %cst_55 = arith.constant dense<0.000000e+00> : vector<6x10xf32>
    %100 = tpu.matmul %19, %99, %cst_55 {dimension_numbers = #tpu.dot_dimension_numbers<[1], [0], [0], [1], [0, 0, 1, 1], [], []>} : vector<6x8xbf16>, vector<8x10xbf16>, vector<6x10xf32> -> vector<6x10xf32>
    %101 = arith.addf %26, %100 : vector<6x10xf32>
    %102 = vector.extract_strided_slice %98 {offsets = [0, 1], sizes = [8, 10], strides = [1, 1]} : vector<8x12xbf16> to vector<8x10xbf16>
    %cst_56 = arith.constant dense<0.000000e+00> : vector<6x10xf32>
    %103 = tpu.matmul %21, %102, %cst_56 {dimension_numbers = #tpu.dot_dimension_numbers<[1], [0], [0], [1], [0, 0, 1, 1], [], []>} : vector<6x8xbf16>, vector<8x10xbf16>, vector<6x10xf32> -> vector<6x10xf32>
    %104 = arith.addf %101, %103 : vector<6x10xf32>
    %105 = vector.extract_strided_slice %98 {offsets = [0, 2], sizes = [8, 10], strides = [1, 1]} : vector<8x12xbf16> to vector<8x10xbf16>
    %cst_57 = arith.constant dense<0.000000e+00> : vector<6x10xf32>
    %106 = tpu.matmul %23, %105, %cst_57 {dimension_numbers = #tpu.dot_dimension_numbers<[1], [0], [0], [1], [0, 0, 1, 1], [], []>} : vector<6x8xbf16>, vector<8x10xbf16>, vector<6x10xf32> -> vector<6x10xf32>
    %107 = arith.addf %104, %106 : vector<6x10xf32>
    %cst_58 = arith.constant dense<0.000000e+00> : vector<6xf32>
    %108 = vector.multi_reduction <add>, %107, %cst_58 [1] : vector<6x10xf32> to vector<6xf32>
    %cst_59 = arith.constant 1.000000e+01 : f32
    %109 = vector.broadcast %cst_59 : f32 to vector<6xf32>
    %110 = arith.divf %108, %109 : vector<6xf32>
    %111 = arith.index_cast %c1_i32 : i32 to index
    %c0_60 = arith.constant 0 : index
    %112 = vector.load %arg8[%111, %c0_60] : memref<8x6xf32, #tpu.memory_space<vmem>>, vector<1x6xf32>
    %113 = vector.shape_cast %112 : vector<1x6xf32> to vector<6xf32>
    %114 = vector.shape_cast %110 : vector<6xf32> to vector<1x6xf32>
    tpu.vector_store %arg8[%111, %c0_60], %114 {strides = array<i32>} : memref<8x6xf32, #tpu.memory_space<vmem>>, vector<1x6xf32>,
    %c2_i32 = arith.constant 2 : i32
    %115 = arith.index_cast %c2_i32 : i32 to index
    %c0_61 = arith.constant 0 : index
    %c0_62 = arith.constant 0 : index
    %116 = vector.load %arg1[%115, %c0_61, %c0_62] : memref<8x4x16xf32, #tpu.memory_space<vmem>>, vector<1x4x16xf32>
    %117 = vector.shape_cast %116 : vector<1x4x16xf32> to vector<4x16xf32>
    %118 = arith.truncf %117 : vector<4x16xf32> to vector<4x16xbf16>
    %119 = vector.extract_strided_slice %118 {offsets = [0, 0], sizes = [4, 14], strides = [1, 1]} : vector<4x16xbf16> to vector<4x14xbf16>
    %cst_63 = arith.constant dense<0.000000e+00> : vector<8x14xf32>
    %120 = tpu.matmul %1, %119, %cst_63 {dimension_numbers = #tpu.dot_dimension_numbers<[1], [0], [0], [1], [0, 0, 1, 1], [], []>} : vector<8x4xbf16>, vector<4x14xbf16>, vector<8x14xf32> -> vector<8x14xf32>
    %121 = arith.addf %8, %120 : vector<8x14xf32>
    %122 = vector.extract_strided_slice %118 {offsets = [0, 1], sizes = [4, 14], strides = [1, 1]} : vector<4x16xbf16> to vector<4x14xbf16>
    %cst_64 = arith.constant dense<0.000000e+00> : vector<8x14xf32>
    %123 = tpu.matmul %3, %122, %cst_64 {dimension_numbers = #tpu.dot_dimension_numbers<[1], [0], [0], [1], [0, 0, 1, 1], [], []>} : vector<8x4xbf16>, vector<4x14xbf16>, vector<8x14xf32> -> vector<8x14xf32>
    %124 = arith.addf %121, %123 : vector<8x14xf32>
    %125 = vector.extract_strided_slice %118 {offsets = [0, 2], sizes = [4, 14], strides = [1, 1]} : vector<4x16xbf16> to vector<4x14xbf16>
    %cst_65 = arith.constant dense<0.000000e+00> : vector<8x14xf32>
    %126 = tpu.matmul %5, %125, %cst_65 {dimension_numbers = #tpu.dot_dimension_numbers<[1], [0], [0], [1], [0, 0, 1, 1], [], []>} : vector<8x4xbf16>, vector<4x14xbf16>, vector<8x14xf32> -> vector<8x14xf32>
    %127 = arith.addf %124, %126 : vector<8x14xf32>
    %cst_66 = arith.constant 0.000000e+00 : f32
    %128 = vector.broadcast %cst_66 : f32 to vector<8x14xf32>
    %129 = arith.maximumf %127, %128 : vector<8x14xf32>
    %130 = arith.truncf %129 : vector<8x14xf32> to vector<8x14xbf16>
    %131 = vector.extract_strided_slice %130 {offsets = [0, 0], sizes = [8, 12], strides = [1, 1]} : vector<8x14xbf16> to vector<8x12xbf16>
    %cst_67 = arith.constant dense<0.000000e+00> : vector<8x12xf32>
    %132 = tpu.matmul %10, %131, %cst_67 {dimension_numbers = #tpu.dot_dimension_numbers<[1], [0], [0], [1], [0, 0, 1, 1], [], []>} : vector<8x8xbf16>, vector<8x12xbf16>, vector<8x12xf32> -> vector<8x12xf32>
    %133 = arith.addf %17, %132 : vector<8x12xf32>
    %134 = vector.extract_strided_slice %130 {offsets = [0, 1], sizes = [8, 12], strides = [1, 1]} : vector<8x14xbf16> to vector<8x12xbf16>
    %cst_68 = arith.constant dense<0.000000e+00> : vector<8x12xf32>
    %135 = tpu.matmul %12, %134, %cst_68 {dimension_numbers = #tpu.dot_dimension_numbers<[1], [0], [0], [1], [0, 0, 1, 1], [], []>} : vector<8x8xbf16>, vector<8x12xbf16>, vector<8x12xf32> -> vector<8x12xf32>
    %136 = arith.addf %133, %135 : vector<8x12xf32>
    %137 = vector.extract_strided_slice %130 {offsets = [0, 2], sizes = [8, 12], strides = [1, 1]} : vector<8x14xbf16> to vector<8x12xbf16>
    %cst_69 = arith.constant dense<0.000000e+00> : vector<8x12xf32>
    %138 = tpu.matmul %14, %137, %cst_69 {dimension_numbers = #tpu.dot_dimension_numbers<[1], [0], [0], [1], [0, 0, 1, 1], [], []>} : vector<8x8xbf16>, vector<8x12xbf16>, vector<8x12xf32> -> vector<8x12xf32>
    %139 = arith.addf %136, %138 : vector<8x12xf32>
    %cst_70 = arith.constant 0.000000e+00 : f32
    %140 = vector.broadcast %cst_70 : f32 to vector<8x12xf32>
    %141 = arith.maximumf %139, %140 : vector<8x12xf32>
    %142 = arith.truncf %141 : vector<8x12xf32> to vector<8x12xbf16>
    %143 = vector.extract_strided_slice %142 {offsets = [0, 0], sizes = [8, 10], strides = [1, 1]} : vector<8x12xbf16> to vector<8x10xbf16>
    %cst_71 = arith.constant dense<0.000000e+00> : vector<6x10xf32>
    %144 = tpu.matmul %19, %143, %cst_71 {dimension_numbers = #tpu.dot_dimension_numbers<[1], [0], [0], [1], [0, 0, 1, 1], [], []>} : vector<6x8xbf16>, vector<8x10xbf16>, vector<6x10xf32> -> vector<6x10xf32>
    %145 = arith.addf %26, %144 : vector<6x10xf32>
    %146 = vector.extract_strided_slice %142 {offsets = [0, 1], sizes = [8, 10], strides = [1, 1]} : vector<8x12xbf16> to vector<8x10xbf16>
    %cst_72 = arith.constant dense<0.000000e+00> : vector<6x10xf32>
    %147 = tpu.matmul %21, %146, %cst_72 {dimension_numbers = #tpu.dot_dimension_numbers<[1], [0], [0], [1], [0, 0, 1, 1], [], []>} : vector<6x8xbf16>, vector<8x10xbf16>, vector<6x10xf32> -> vector<6x10xf32>
    %148 = arith.addf %145, %147 : vector<6x10xf32>
    %149 = vector.extract_strided_slice %142 {offsets = [0, 2], sizes = [8, 10], strides = [1, 1]} : vector<8x12xbf16> to vector<8x10xbf16>
    %cst_73 = arith.constant dense<0.000000e+00> : vector<6x10xf32>
    %150 = tpu.matmul %23, %149, %cst_73 {dimension_numbers = #tpu.dot_dimension_numbers<[1], [0], [0], [1], [0, 0, 1, 1], [], []>} : vector<6x8xbf16>, vector<8x10xbf16>, vector<6x10xf32> -> vector<6x10xf32>
    %151 = arith.addf %148, %150 : vector<6x10xf32>
    %cst_74 = arith.constant dense<0.000000e+00> : vector<6xf32>
    %152 = vector.multi_reduction <add>, %151, %cst_74 [1] : vector<6x10xf32> to vector<6xf32>
    %cst_75 = arith.constant 1.000000e+01 : f32
    %153 = vector.broadcast %cst_75 : f32 to vector<6xf32>
    %154 = arith.divf %152, %153 : vector<6xf32>
    %155 = arith.index_cast %c2_i32 : i32 to index
    %c0_76 = arith.constant 0 : index
    %156 = vector.load %arg8[%155, %c0_76] : memref<8x6xf32, #tpu.memory_space<vmem>>, vector<1x6xf32>
    %157 = vector.shape_cast %156 : vector<1x6xf32> to vector<6xf32>
    %158 = vector.shape_cast %154 : vector<6xf32> to vector<1x6xf32>
    tpu.vector_store %arg8[%155, %c0_76], %158 {strides = array<i32>} : memref<8x6xf32, #tpu.memory_space<vmem>>, vector<1x6xf32>,
    %c3_i32 = arith.constant 3 : i32
    %159 = arith.index_cast %c3_i32 : i32 to index
    %c0_77 = arith.constant 0 : index
    %c0_78 = arith.constant 0 : index
    %160 = vector.load %arg1[%159, %c0_77, %c0_78] : memref<8x4x16xf32, #tpu.memory_space<vmem>>, vector<1x4x16xf32>
    %161 = vector.shape_cast %160 : vector<1x4x16xf32> to vector<4x16xf32>
    %162 = arith.truncf %161 : vector<4x16xf32> to vector<4x16xbf16>
    %163 = vector.extract_strided_slice %162 {offsets = [0, 0], sizes = [4, 14], strides = [1, 1]} : vector<4x16xbf16> to vector<4x14xbf16>
    %cst_79 = arith.constant dense<0.000000e+00> : vector<8x14xf32>
    %164 = tpu.matmul %1, %163, %cst_79 {dimension_numbers = #tpu.dot_dimension_numbers<[1], [0], [0], [1], [0, 0, 1, 1], [], []>} : vector<8x4xbf16>, vector<4x14xbf16>, vector<8x14xf32> -> vector<8x14xf32>
    %165 = arith.addf %8, %164 : vector<8x14xf32>
    %166 = vector.extract_strided_slice %162 {offsets = [0, 1], sizes = [4, 14], strides = [1, 1]} : vector<4x16xbf16> to vector<4x14xbf16>
    %cst_80 = arith.constant dense<0.000000e+00> : vector<8x14xf32>
    %167 = tpu.matmul %3, %166, %cst_80 {dimension_numbers = #tpu.dot_dimension_numbers<[1], [0], [0], [1], [0, 0, 1, 1], [], []>} : vector<8x4xbf16>, vector<4x14xbf16>, vector<8x14xf32> -> vector<8x14xf32>
    %168 = arith.addf %165, %167 : vector<8x14xf32>
    %169 = vector.extract_strided_slice %162 {offsets = [0, 2], sizes = [4, 14], strides = [1, 1]} : vector<4x16xbf16> to vector<4x14xbf16>
    %cst_81 = arith.constant dense<0.000000e+00> : vector<8x14xf32>
    %170 = tpu.matmul %5, %169, %cst_81 {dimension_numbers = #tpu.dot_dimension_numbers<[1], [0], [0], [1], [0, 0, 1, 1], [], []>} : vector<8x4xbf16>, vector<4x14xbf16>, vector<8x14xf32> -> vector<8x14xf32>
    %171 = arith.addf %168, %170 : vector<8x14xf32>
    %cst_82 = arith.constant 0.000000e+00 : f32
    %172 = vector.broadcast %cst_82 : f32 to vector<8x14xf32>
    %173 = arith.maximumf %171, %172 : vector<8x14xf32>
    %174 = arith.truncf %173 : vector<8x14xf32> to vector<8x14xbf16>
    %175 = vector.extract_strided_slice %174 {offsets = [0, 0], sizes = [8, 12], strides = [1, 1]} : vector<8x14xbf16> to vector<8x12xbf16>
    %cst_83 = arith.constant dense<0.000000e+00> : vector<8x12xf32>
    %176 = tpu.matmul %10, %175, %cst_83 {dimension_numbers = #tpu.dot_dimension_numbers<[1], [0], [0], [1], [0, 0, 1, 1], [], []>} : vector<8x8xbf16>, vector<8x12xbf16>, vector<8x12xf32> -> vector<8x12xf32>
    %177 = arith.addf %17, %176 : vector<8x12xf32>
    %178 = vector.extract_strided_slice %174 {offsets = [0, 1], sizes = [8, 12], strides = [1, 1]} : vector<8x14xbf16> to vector<8x12xbf16>
    %cst_84 = arith.constant dense<0.000000e+00> : vector<8x12xf32>
    %179 = tpu.matmul %12, %178, %cst_84 {dimension_numbers = #tpu.dot_dimension_numbers<[1], [0], [0], [1], [0, 0, 1, 1], [], []>} : vector<8x8xbf16>, vector<8x12xbf16>, vector<8x12xf32> -> vector<8x12xf32>
    %180 = arith.addf %177, %179 : vector<8x12xf32>
    %181 = vector.extract_strided_slice %174 {offsets = [0, 2], sizes = [8, 12], strides = [1, 1]} : vector<8x14xbf16> to vector<8x12xbf16>
    %cst_85 = arith.constant dense<0.000000e+00> : vector<8x12xf32>
    %182 = tpu.matmul %14, %181, %cst_85 {dimension_numbers = #tpu.dot_dimension_numbers<[1], [0], [0], [1], [0, 0, 1, 1], [], []>} : vector<8x8xbf16>, vector<8x12xbf16>, vector<8x12xf32> -> vector<8x12xf32>
    %183 = arith.addf %180, %182 : vector<8x12xf32>
    %cst_86 = arith.constant 0.000000e+00 : f32
    %184 = vector.broadcast %cst_86 : f32 to vector<8x12xf32>
    %185 = arith.maximumf %183, %184 : vector<8x12xf32>
    %186 = arith.truncf %185 : vector<8x12xf32> to vector<8x12xbf16>
    %187 = vector.extract_strided_slice %186 {offsets = [0, 0], sizes = [8, 10], strides = [1, 1]} : vector<8x12xbf16> to vector<8x10xbf16>
    %cst_87 = arith.constant dense<0.000000e+00> : vector<6x10xf32>
    %188 = tpu.matmul %19, %187, %cst_87 {dimension_numbers = #tpu.dot_dimension_numbers<[1], [0], [0], [1], [0, 0, 1, 1], [], []>} : vector<6x8xbf16>, vector<8x10xbf16>, vector<6x10xf32> -> vector<6x10xf32>
    %189 = arith.addf %26, %188 : vector<6x10xf32>
    %190 = vector.extract_strided_slice %186 {offsets = [0, 1], sizes = [8, 10], strides = [1, 1]} : vector<8x12xbf16> to vector<8x10xbf16>
    %cst_88 = arith.constant dense<0.000000e+00> : vector<6x10xf32>
    %191 = tpu.matmul %21, %190, %cst_88 {dimension_numbers = #tpu.dot_dimension_numbers<[1], [0], [0], [1], [0, 0, 1, 1], [], []>} : vector<6x8xbf16>, vector<8x10xbf16>, vector<6x10xf32> -> vector<6x10xf32>
    %192 = arith.addf %189, %191 : vector<6x10xf32>
    %193 = vector.extract_strided_slice %186 {offsets = [0, 2], sizes = [8, 10], strides = [1, 1]} : vector<8x12xbf16> to vector<8x10xbf16>
    %cst_89 = arith.constant dense<0.000000e+00> : vector<6x10xf32>
    %194 = tpu.matmul %23, %193, %cst_89 {dimension_numbers = #tpu.dot_dimension_numbers<[1], [0], [0], [1], [0, 0, 1, 1], [], []>} : vector<6x8xbf16>, vector<8x10xbf16>, vector<6x10xf32> -> vector<6x10xf32>
    %195 = arith.addf %192, %194 : vector<6x10xf32>
    %cst_90 = arith.constant dense<0.000000e+00> : vector<6xf32>
    %196 = vector.multi_reduction <add>, %195, %cst_90 [1] : vector<6x10xf32> to vector<6xf32>
    %cst_91 = arith.constant 1.000000e+01 : f32
    %197 = vector.broadcast %cst_91 : f32 to vector<6xf32>
    %198 = arith.divf %196, %197 : vector<6xf32>
    %199 = arith.index_cast %c3_i32 : i32 to index
    %c0_92 = arith.constant 0 : index
    %200 = vector.load %arg8[%199, %c0_92] : memref<8x6xf32, #tpu.memory_space<vmem>>, vector<1x6xf32>
    %201 = vector.shape_cast %200 : vector<1x6xf32> to vector<6xf32>
    %202 = vector.shape_cast %198 : vector<6xf32> to vector<1x6xf32>
    tpu.vector_store %arg8[%199, %c0_92], %202 {strides = array<i32>} : memref<8x6xf32, #tpu.memory_space<vmem>>, vector<1x6xf32>,
    %c4_i32 = arith.constant 4 : i32
    %203 = arith.index_cast %c4_i32 : i32 to index
    %c0_93 = arith.constant 0 : index
    %c0_94 = arith.constant 0 : index
    %204 = vector.load %arg1[%203, %c0_93, %c0_94] : memref<8x4x16xf32, #tpu.memory_space<vmem>>, vector<1x4x16xf32>
    %205 = vector.shape_cast %204 : vector<1x4x16xf32> to vector<4x16xf32>
    %206 = arith.truncf %205 : vector<4x16xf32> to vector<4x16xbf16>
    %207 = vector.extract_strided_slice %206 {offsets = [0, 0], sizes = [4, 14], strides = [1, 1]} : vector<4x16xbf16> to vector<4x14xbf16>
    %cst_95 = arith.constant dense<0.000000e+00> : vector<8x14xf32>
    %208 = tpu.matmul %1, %207, %cst_95 {dimension_numbers = #tpu.dot_dimension_numbers<[1], [0], [0], [1], [0, 0, 1, 1], [], []>} : vector<8x4xbf16>, vector<4x14xbf16>, vector<8x14xf32> -> vector<8x14xf32>
    %209 = arith.addf %8, %208 : vector<8x14xf32>
    %210 = vector.extract_strided_slice %206 {offsets = [0, 1], sizes = [4, 14], strides = [1, 1]} : vector<4x16xbf16> to vector<4x14xbf16>
    %cst_96 = arith.constant dense<0.000000e+00> : vector<8x14xf32>
    %211 = tpu.matmul %3, %210, %cst_96 {dimension_numbers = #tpu.dot_dimension_numbers<[1], [0], [0], [1], [0, 0, 1, 1], [], []>} : vector<8x4xbf16>, vector<4x14xbf16>, vector<8x14xf32> -> vector<8x14xf32>
    %212 = arith.addf %209, %211 : vector<8x14xf32>
    %213 = vector.extract_strided_slice %206 {offsets = [0, 2], sizes = [4, 14], strides = [1, 1]} : vector<4x16xbf16> to vector<4x14xbf16>
    %cst_97 = arith.constant dense<0.000000e+00> : vector<8x14xf32>
    %214 = tpu.matmul %5, %213, %cst_97 {dimension_numbers = #tpu.dot_dimension_numbers<[1], [0], [0], [1], [0, 0, 1, 1], [], []>} : vector<8x4xbf16>, vector<4x14xbf16>, vector<8x14xf32> -> vector<8x14xf32>
    %215 = arith.addf %212, %214 : vector<8x14xf32>
    %cst_98 = arith.constant 0.000000e+00 : f32
    %216 = vector.broadcast %cst_98 : f32 to vector<8x14xf32>
    %217 = arith.maximumf %215, %216 : vector<8x14xf32>
    %218 = arith.truncf %217 : vector<8x14xf32> to vector<8x14xbf16>
    %219 = vector.extract_strided_slice %218 {offsets = [0, 0], sizes = [8, 12], strides = [1, 1]} : vector<8x14xbf16> to vector<8x12xbf16>
    %cst_99 = arith.constant dense<0.000000e+00> : vector<8x12xf32>
    %220 = tpu.matmul %10, %219, %cst_99 {dimension_numbers = #tpu.dot_dimension_numbers<[1], [0], [0], [1], [0, 0, 1, 1], [], []>} : vector<8x8xbf16>, vector<8x12xbf16>, vector<8x12xf32> -> vector<8x12xf32>
    %221 = arith.addf %17, %220 : vector<8x12xf32>
    %222 = vector.extract_strided_slice %218 {offsets = [0, 1], sizes = [8, 12], strides = [1, 1]} : vector<8x14xbf16> to vector<8x12xbf16>
    %cst_100 = arith.constant dense<0.000000e+00> : vector<8x12xf32>
    %223 = tpu.matmul %12, %222, %cst_100 {dimension_numbers = #tpu.dot_dimension_numbers<[1], [0], [0], [1], [0, 0, 1, 1], [], []>} : vector<8x8xbf16>, vector<8x12xbf16>, vector<8x12xf32> -> vector<8x12xf32>
    %224 = arith.addf %221, %223 : vector<8x12xf32>
    %225 = vector.extract_strided_slice %218 {offsets = [0, 2], sizes = [8, 12], strides = [1, 1]} : vector<8x14xbf16> to vector<8x12xbf16>
    %cst_101 = arith.constant dense<0.000000e+00> : vector<8x12xf32>
    %226 = tpu.matmul %14, %225, %cst_101 {dimension_numbers = #tpu.dot_dimension_numbers<[1], [0], [0], [1], [0, 0, 1, 1], [], []>} : vector<8x8xbf16>, vector<8x12xbf16>, vector<8x12xf32> -> vector<8x12xf32>
    %227 = arith.addf %224, %226 : vector<8x12xf32>
    %cst_102 = arith.constant 0.000000e+00 : f32
    %228 = vector.broadcast %cst_102 : f32 to vector<8x12xf32>
    %229 = arith.maximumf %227, %228 : vector<8x12xf32>
    %230 = arith.truncf %229 : vector<8x12xf32> to vector<8x12xbf16>
    %231 = vector.extract_strided_slice %230 {offsets = [0, 0], sizes = [8, 10], strides = [1, 1]} : vector<8x12xbf16> to vector<8x10xbf16>
    %cst_103 = arith.constant dense<0.000000e+00> : vector<6x10xf32>
    %232 = tpu.matmul %19, %231, %cst_103 {dimension_numbers = #tpu.dot_dimension_numbers<[1], [0], [0], [1], [0, 0, 1, 1], [], []>} : vector<6x8xbf16>, vector<8x10xbf16>, vector<6x10xf32> -> vector<6x10xf32>
    %233 = arith.addf %26, %232 : vector<6x10xf32>
    %234 = vector.extract_strided_slice %230 {offsets = [0, 1], sizes = [8, 10], strides = [1, 1]} : vector<8x12xbf16> to vector<8x10xbf16>
    %cst_104 = arith.constant dense<0.000000e+00> : vector<6x10xf32>
    %235 = tpu.matmul %21, %234, %cst_104 {dimension_numbers = #tpu.dot_dimension_numbers<[1], [0], [0], [1], [0, 0, 1, 1], [], []>} : vector<6x8xbf16>, vector<8x10xbf16>, vector<6x10xf32> -> vector<6x10xf32>
    %236 = arith.addf %233, %235 : vector<6x10xf32>
    %237 = vector.extract_strided_slice %230 {offsets = [0, 2], sizes = [8, 10], strides = [1, 1]} : vector<8x12xbf16> to vector<8x10xbf16>
    %cst_105 = arith.constant dense<0.000000e+00> : vector<6x10xf32>
    %238 = tpu.matmul %23, %237, %cst_105 {dimension_numbers = #tpu.dot_dimension_numbers<[1], [0], [0], [1], [0, 0, 1, 1], [], []>} : vector<6x8xbf16>, vector<8x10xbf16>, vector<6x10xf32> -> vector<6x10xf32>
    %239 = arith.addf %236, %238 : vector<6x10xf32>
    %cst_106 = arith.constant dense<0.000000e+00> : vector<6xf32>
    %240 = vector.multi_reduction <add>, %239, %cst_106 [1] : vector<6x10xf32> to vector<6xf32>
    %cst_107 = arith.constant 1.000000e+01 : f32
    %241 = vector.broadcast %cst_107 : f32 to vector<6xf32>
    %242 = arith.divf %240, %241 : vector<6xf32>
    %243 = arith.index_cast %c4_i32 : i32 to index
    %c0_108 = arith.constant 0 : index
    %244 = vector.load %arg8[%243, %c0_108] : memref<8x6xf32, #tpu.memory_space<vmem>>, vector<1x6xf32>
    %245 = vector.shape_cast %244 : vector<1x6xf32> to vector<6xf32>
    %246 = vector.shape_cast %242 : vector<6xf32> to vector<1x6xf32>
    tpu.vector_store %arg8[%243, %c0_108], %246 {strides = array<i32>} : memref<8x6xf32, #tpu.memory_space<vmem>>, vector<1x6xf32>,
    %c5_i32 = arith.constant 5 : i32
    %247 = arith.index_cast %c5_i32 : i32 to index
    %c0_109 = arith.constant 0 : index
    %c0_110 = arith.constant 0 : index
    %248 = vector.load %arg1[%247, %c0_109, %c0_110] : memref<8x4x16xf32, #tpu.memory_space<vmem>>, vector<1x4x16xf32>
    %249 = vector.shape_cast %248 : vector<1x4x16xf32> to vector<4x16xf32>
    %250 = arith.truncf %249 : vector<4x16xf32> to vector<4x16xbf16>
    %251 = vector.extract_strided_slice %250 {offsets = [0, 0], sizes = [4, 14], strides = [1, 1]} : vector<4x16xbf16> to vector<4x14xbf16>
    %cst_111 = arith.constant dense<0.000000e+00> : vector<8x14xf32>
    %252 = tpu.matmul %1, %251, %cst_111 {dimension_numbers = #tpu.dot_dimension_numbers<[1], [0], [0], [1], [0, 0, 1, 1], [], []>} : vector<8x4xbf16>, vector<4x14xbf16>, vector<8x14xf32> -> vector<8x14xf32>
    %253 = arith.addf %8, %252 : vector<8x14xf32>
    %254 = vector.extract_strided_slice %250 {offsets = [0, 1], sizes = [4, 14], strides = [1, 1]} : vector<4x16xbf16> to vector<4x14xbf16>
    %cst_112 = arith.constant dense<0.000000e+00> : vector<8x14xf32>
    %255 = tpu.matmul %3, %254, %cst_112 {dimension_numbers = #tpu.dot_dimension_numbers<[1], [0], [0], [1], [0, 0, 1, 1], [], []>} : vector<8x4xbf16>, vector<4x14xbf16>, vector<8x14xf32> -> vector<8x14xf32>
    %256 = arith.addf %253, %255 : vector<8x14xf32>
    %257 = vector.extract_strided_slice %250 {offsets = [0, 2], sizes = [4, 14], strides = [1, 1]} : vector<4x16xbf16> to vector<4x14xbf16>
    %cst_113 = arith.constant dense<0.000000e+00> : vector<8x14xf32>
    %258 = tpu.matmul %5, %257, %cst_113 {dimension_numbers = #tpu.dot_dimension_numbers<[1], [0], [0], [1], [0, 0, 1, 1], [], []>} : vector<8x4xbf16>, vector<4x14xbf16>, vector<8x14xf32> -> vector<8x14xf32>
    %259 = arith.addf %256, %258 : vector<8x14xf32>
    %cst_114 = arith.constant 0.000000e+00 : f32
    %260 = vector.broadcast %cst_114 : f32 to vector<8x14xf32>
    %261 = arith.maximumf %259, %260 : vector<8x14xf32>
    %262 = arith.truncf %261 : vector<8x14xf32> to vector<8x14xbf16>
    %263 = vector.extract_strided_slice %262 {offsets = [0, 0], sizes = [8, 12], strides = [1, 1]} : vector<8x14xbf16> to vector<8x12xbf16>
    %cst_115 = arith.constant dense<0.000000e+00> : vector<8x12xf32>
    %264 = tpu.matmul %10, %263, %cst_115 {dimension_numbers = #tpu.dot_dimension_numbers<[1], [0], [0], [1], [0, 0, 1, 1], [], []>} : vector<8x8xbf16>, vector<8x12xbf16>, vector<8x12xf32> -> vector<8x12xf32>
    %265 = arith.addf %17, %264 : vector<8x12xf32>
    %266 = vector.extract_strided_slice %262 {offsets = [0, 1], sizes = [8, 12], strides = [1, 1]} : vector<8x14xbf16> to vector<8x12xbf16>
    %cst_116 = arith.constant dense<0.000000e+00> : vector<8x12xf32>
    %267 = tpu.matmul %12, %266, %cst_116 {dimension_numbers = #tpu.dot_dimension_numbers<[1], [0], [0], [1], [0, 0, 1, 1], [], []>} : vector<8x8xbf16>, vector<8x12xbf16>, vector<8x12xf32> -> vector<8x12xf32>
    %268 = arith.addf %265, %267 : vector<8x12xf32>
    %269 = vector.extract_strided_slice %262 {offsets = [0, 2], sizes = [8, 12], strides = [1, 1]} : vector<8x14xbf16> to vector<8x12xbf16>
    %cst_117 = arith.constant dense<0.000000e+00> : vector<8x12xf32>
    %270 = tpu.matmul %14, %269, %cst_117 {dimension_numbers = #tpu.dot_dimension_numbers<[1], [0], [0], [1], [0, 0, 1, 1], [], []>} : vector<8x8xbf16>, vector<8x12xbf16>, vector<8x12xf32> -> vector<8x12xf32>
    %271 = arith.addf %268, %270 : vector<8x12xf32>
    %cst_118 = arith.constant 0.000000e+00 : f32
    %272 = vector.broadcast %cst_118 : f32 to vector<8x12xf32>
    %273 = arith.maximumf %271, %272 : vector<8x12xf32>
    %274 = arith.truncf %273 : vector<8x12xf32> to vector<8x12xbf16>
    %275 = vector.extract_strided_slice %274 {offsets = [0, 0], sizes = [8, 10], strides = [1, 1]} : vector<8x12xbf16> to vector<8x10xbf16>
    %cst_119 = arith.constant dense<0.000000e+00> : vector<6x10xf32>
    %276 = tpu.matmul %19, %275, %cst_119 {dimension_numbers = #tpu.dot_dimension_numbers<[1], [0], [0], [1], [0, 0, 1, 1], [], []>} : vector<6x8xbf16>, vector<8x10xbf16>, vector<6x10xf32> -> vector<6x10xf32>
    %277 = arith.addf %26, %276 : vector<6x10xf32>
    %278 = vector.extract_strided_slice %274 {offsets = [0, 1], sizes = [8, 10], strides = [1, 1]} : vector<8x12xbf16> to vector<8x10xbf16>
    %cst_120 = arith.constant dense<0.000000e+00> : vector<6x10xf32>
    %279 = tpu.matmul %21, %278, %cst_120 {dimension_numbers = #tpu.dot_dimension_numbers<[1], [0], [0], [1], [0, 0, 1, 1], [], []>} : vector<6x8xbf16>, vector<8x10xbf16>, vector<6x10xf32> -> vector<6x10xf32>
    %280 = arith.addf %277, %279 : vector<6x10xf32>
    %281 = vector.extract_strided_slice %274 {offsets = [0, 2], sizes = [8, 10], strides = [1, 1]} : vector<8x12xbf16> to vector<8x10xbf16>
    %cst_121 = arith.constant dense<0.000000e+00> : vector<6x10xf32>
    %282 = tpu.matmul %23, %281, %cst_121 {dimension_numbers = #tpu.dot_dimension_numbers<[1], [0], [0], [1], [0, 0, 1, 1], [], []>} : vector<6x8xbf16>, vector<8x10xbf16>, vector<6x10xf32> -> vector<6x10xf32>
    %283 = arith.addf %280, %282 : vector<6x10xf32>
    %cst_122 = arith.constant dense<0.000000e+00> : vector<6xf32>
    %284 = vector.multi_reduction <add>, %283, %cst_122 [1] : vector<6x10xf32> to vector<6xf32>
    %cst_123 = arith.constant 1.000000e+01 : f32
    %285 = vector.broadcast %cst_123 : f32 to vector<6xf32>
    %286 = arith.divf %284, %285 : vector<6xf32>
    %287 = arith.index_cast %c5_i32 : i32 to index
    %c0_124 = arith.constant 0 : index
    %288 = vector.load %arg8[%287, %c0_124] : memref<8x6xf32, #tpu.memory_space<vmem>>, vector<1x6xf32>
    %289 = vector.shape_cast %288 : vector<1x6xf32> to vector<6xf32>
    %290 = vector.shape_cast %286 : vector<6xf32> to vector<1x6xf32>
    tpu.vector_store %arg8[%287, %c0_124], %290 {strides = array<i32>} : memref<8x6xf32, #tpu.memory_space<vmem>>, vector<1x6xf32>,
    %c6_i32 = arith.constant 6 : i32
    %291 = arith.index_cast %c6_i32 : i32 to index
    %c0_125 = arith.constant 0 : index
    %c0_126 = arith.constant 0 : index
    %292 = vector.load %arg1[%291, %c0_125, %c0_126] : memref<8x4x16xf32, #tpu.memory_space<vmem>>, vector<1x4x16xf32>
    %293 = vector.shape_cast %292 : vector<1x4x16xf32> to vector<4x16xf32>
    %294 = arith.truncf %293 : vector<4x16xf32> to vector<4x16xbf16>
    %295 = vector.extract_strided_slice %294 {offsets = [0, 0], sizes = [4, 14], strides = [1, 1]} : vector<4x16xbf16> to vector<4x14xbf16>
    %cst_127 = arith.constant dense<0.000000e+00> : vector<8x14xf32>
    %296 = tpu.matmul %1, %295, %cst_127 {dimension_numbers = #tpu.dot_dimension_numbers<[1], [0], [0], [1], [0, 0, 1, 1], [], []>} : vector<8x4xbf16>, vector<4x14xbf16>, vector<8x14xf32> -> vector<8x14xf32>
    %297 = arith.addf %8, %296 : vector<8x14xf32>
    %298 = vector.extract_strided_slice %294 {offsets = [0, 1], sizes = [4, 14], strides = [1, 1]} : vector<4x16xbf16> to vector<4x14xbf16>
    %cst_128 = arith.constant dense<0.000000e+00> : vector<8x14xf32>
    %299 = tpu.matmul %3, %298, %cst_128 {dimension_numbers = #tpu.dot_dimension_numbers<[1], [0], [0], [1], [0, 0, 1, 1], [], []>} : vector<8x4xbf16>, vector<4x14xbf16>, vector<8x14xf32> -> vector<8x14xf32>
    %300 = arith.addf %297, %299 : vector<8x14xf32>
    %301 = vector.extract_strided_slice %294 {offsets = [0, 2], sizes = [4, 14], strides = [1, 1]} : vector<4x16xbf16> to vector<4x14xbf16>
    %cst_129 = arith.constant dense<0.000000e+00> : vector<8x14xf32>
    %302 = tpu.matmul %5, %301, %cst_129 {dimension_numbers = #tpu.dot_dimension_numbers<[1], [0], [0], [1], [0, 0, 1, 1], [], []>} : vector<8x4xbf16>, vector<4x14xbf16>, vector<8x14xf32> -> vector<8x14xf32>
    %303 = arith.addf %300, %302 : vector<8x14xf32>
    %cst_130 = arith.constant 0.000000e+00 : f32
    %304 = vector.broadcast %cst_130 : f32 to vector<8x14xf32>
    %305 = arith.maximumf %303, %304 : vector<8x14xf32>
    %306 = arith.truncf %305 : vector<8x14xf32> to vector<8x14xbf16>
    %307 = vector.extract_strided_slice %306 {offsets = [0, 0], sizes = [8, 12], strides = [1, 1]} : vector<8x14xbf16> to vector<8x12xbf16>
    %cst_131 = arith.constant dense<0.000000e+00> : vector<8x12xf32>
    %308 = tpu.matmul %10, %307, %cst_131 {dimension_numbers = #tpu.dot_dimension_numbers<[1], [0], [0], [1], [0, 0, 1, 1], [], []>} : vector<8x8xbf16>, vector<8x12xbf16>, vector<8x12xf32> -> vector<8x12xf32>
    %309 = arith.addf %17, %308 : vector<8x12xf32>
    %310 = vector.extract_strided_slice %306 {offsets = [0, 1], sizes = [8, 12], strides = [1, 1]} : vector<8x14xbf16> to vector<8x12xbf16>
    %cst_132 = arith.constant dense<0.000000e+00> : vector<8x12xf32>
    %311 = tpu.matmul %12, %310, %cst_132 {dimension_numbers = #tpu.dot_dimension_numbers<[1], [0], [0], [1], [0, 0, 1, 1], [], []>} : vector<8x8xbf16>, vector<8x12xbf16>, vector<8x12xf32> -> vector<8x12xf32>
    %312 = arith.addf %309, %311 : vector<8x12xf32>
    %313 = vector.extract_strided_slice %306 {offsets = [0, 2], sizes = [8, 12], strides = [1, 1]} : vector<8x14xbf16> to vector<8x12xbf16>
    %cst_133 = arith.constant dense<0.000000e+00> : vector<8x12xf32>
    %314 = tpu.matmul %14, %313, %cst_133 {dimension_numbers = #tpu.dot_dimension_numbers<[1], [0], [0], [1], [0, 0, 1, 1], [], []>} : vector<8x8xbf16>, vector<8x12xbf16>, vector<8x12xf32> -> vector<8x12xf32>
    %315 = arith.addf %312, %314 : vector<8x12xf32>
    %cst_134 = arith.constant 0.000000e+00 : f32
    %316 = vector.broadcast %cst_134 : f32 to vector<8x12xf32>
    %317 = arith.maximumf %315, %316 : vector<8x12xf32>
    %318 = arith.truncf %317 : vector<8x12xf32> to vector<8x12xbf16>
    %319 = vector.extract_strided_slice %318 {offsets = [0, 0], sizes = [8, 10], strides = [1, 1]} : vector<8x12xbf16> to vector<8x10xbf16>
    %cst_135 = arith.constant dense<0.000000e+00> : vector<6x10xf32>
    %320 = tpu.matmul %19, %319, %cst_135 {dimension_numbers = #tpu.dot_dimension_numbers<[1], [0], [0], [1], [0, 0, 1, 1], [], []>} : vector<6x8xbf16>, vector<8x10xbf16>, vector<6x10xf32> -> vector<6x10xf32>
    %321 = arith.addf %26, %320 : vector<6x10xf32>
    %322 = vector.extract_strided_slice %318 {offsets = [0, 1], sizes = [8, 10], strides = [1, 1]} : vector<8x12xbf16> to vector<8x10xbf16>
    %cst_136 = arith.constant dense<0.000000e+00> : vector<6x10xf32>
    %323 = tpu.matmul %21, %322, %cst_136 {dimension_numbers = #tpu.dot_dimension_numbers<[1], [0], [0], [1], [0, 0, 1, 1], [], []>} : vector<6x8xbf16>, vector<8x10xbf16>, vector<6x10xf32> -> vector<6x10xf32>
    %324 = arith.addf %321, %323 : vector<6x10xf32>
    %325 = vector.extract_strided_slice %318 {offsets = [0, 2], sizes = [8, 10], strides = [1, 1]} : vector<8x12xbf16> to vector<8x10xbf16>
    %cst_137 = arith.constant dense<0.000000e+00> : vector<6x10xf32>
    %326 = tpu.matmul %23, %325, %cst_137 {dimension_numbers = #tpu.dot_dimension_numbers<[1], [0], [0], [1], [0, 0, 1, 1], [], []>} : vector<6x8xbf16>, vector<8x10xbf16>, vector<6x10xf32> -> vector<6x10xf32>
    %327 = arith.addf %324, %326 : vector<6x10xf32>
    %cst_138 = arith.constant dense<0.000000e+00> : vector<6xf32>
    %328 = vector.multi_reduction <add>, %327, %cst_138 [1] : vector<6x10xf32> to vector<6xf32>
    %cst_139 = arith.constant 1.000000e+01 : f32
    %329 = vector.broadcast %cst_139 : f32 to vector<6xf32>
    %330 = arith.divf %328, %329 : vector<6xf32>
    %331 = arith.index_cast %c6_i32 : i32 to index
    %c0_140 = arith.constant 0 : index
    %332 = vector.load %arg8[%331, %c0_140] : memref<8x6xf32, #tpu.memory_space<vmem>>, vector<1x6xf32>
    %333 = vector.shape_cast %332 : vector<1x6xf32> to vector<6xf32>
    %334 = vector.shape_cast %330 : vector<6xf32> to vector<1x6xf32>
    tpu.vector_store %arg8[%331, %c0_140], %334 {strides = array<i32>} : memref<8x6xf32, #tpu.memory_space<vmem>>, vector<1x6xf32>,
    %c7_i32 = arith.constant 7 : i32
    %335 = arith.index_cast %c7_i32 : i32 to index
    %c0_141 = arith.constant 0 : index
    %c0_142 = arith.constant 0 : index
    %336 = vector.load %arg1[%335, %c0_141, %c0_142] : memref<8x4x16xf32, #tpu.memory_space<vmem>>, vector<1x4x16xf32>
    %337 = vector.shape_cast %336 : vector<1x4x16xf32> to vector<4x16xf32>
    %338 = arith.truncf %337 : vector<4x16xf32> to vector<4x16xbf16>
    %339 = vector.extract_strided_slice %338 {offsets = [0, 0], sizes = [4, 14], strides = [1, 1]} : vector<4x16xbf16> to vector<4x14xbf16>
    %cst_143 = arith.constant dense<0.000000e+00> : vector<8x14xf32>
    %340 = tpu.matmul %1, %339, %cst_143 {dimension_numbers = #tpu.dot_dimension_numbers<[1], [0], [0], [1], [0, 0, 1, 1], [], []>} : vector<8x4xbf16>, vector<4x14xbf16>, vector<8x14xf32> -> vector<8x14xf32>
    %341 = arith.addf %8, %340 : vector<8x14xf32>
    %342 = vector.extract_strided_slice %338 {offsets = [0, 1], sizes = [4, 14], strides = [1, 1]} : vector<4x16xbf16> to vector<4x14xbf16>
    %cst_144 = arith.constant dense<0.000000e+00> : vector<8x14xf32>
    %343 = tpu.matmul %3, %342, %cst_144 {dimension_numbers = #tpu.dot_dimension_numbers<[1], [0], [0], [1], [0, 0, 1, 1], [], []>} : vector<8x4xbf16>, vector<4x14xbf16>, vector<8x14xf32> -> vector<8x14xf32>
    %344 = arith.addf %341, %343 : vector<8x14xf32>
    %345 = vector.extract_strided_slice %338 {offsets = [0, 2], sizes = [4, 14], strides = [1, 1]} : vector<4x16xbf16> to vector<4x14xbf16>
    %cst_145 = arith.constant dense<0.000000e+00> : vector<8x14xf32>
    %346 = tpu.matmul %5, %345, %cst_145 {dimension_numbers = #tpu.dot_dimension_numbers<[1], [0], [0], [1], [0, 0, 1, 1], [], []>} : vector<8x4xbf16>, vector<4x14xbf16>, vector<8x14xf32> -> vector<8x14xf32>
    %347 = arith.addf %344, %346 : vector<8x14xf32>
    %cst_146 = arith.constant 0.000000e+00 : f32
    %348 = vector.broadcast %cst_146 : f32 to vector<8x14xf32>
    %349 = arith.maximumf %347, %348 : vector<8x14xf32>
    %350 = arith.truncf %349 : vector<8x14xf32> to vector<8x14xbf16>
    %351 = vector.extract_strided_slice %350 {offsets = [0, 0], sizes = [8, 12], strides = [1, 1]} : vector<8x14xbf16> to vector<8x12xbf16>
    %cst_147 = arith.constant dense<0.000000e+00> : vector<8x12xf32>
    %352 = tpu.matmul %10, %351, %cst_147 {dimension_numbers = #tpu.dot_dimension_numbers<[1], [0], [0], [1], [0, 0, 1, 1], [], []>} : vector<8x8xbf16>, vector<8x12xbf16>, vector<8x12xf32> -> vector<8x12xf32>
    %353 = arith.addf %17, %352 : vector<8x12xf32>
    %354 = vector.extract_strided_slice %350 {offsets = [0, 1], sizes = [8, 12], strides = [1, 1]} : vector<8x14xbf16> to vector<8x12xbf16>
    %cst_148 = arith.constant dense<0.000000e+00> : vector<8x12xf32>
    %355 = tpu.matmul %12, %354, %cst_148 {dimension_numbers = #tpu.dot_dimension_numbers<[1], [0], [0], [1], [0, 0, 1, 1], [], []>} : vector<8x8xbf16>, vector<8x12xbf16>, vector<8x12xf32> -> vector<8x12xf32>
    %356 = arith.addf %353, %355 : vector<8x12xf32>
    %357 = vector.extract_strided_slice %350 {offsets = [0, 2], sizes = [8, 12], strides = [1, 1]} : vector<8x14xbf16> to vector<8x12xbf16>
    %cst_149 = arith.constant dense<0.000000e+00> : vector<8x12xf32>
    %358 = tpu.matmul %14, %357, %cst_149 {dimension_numbers = #tpu.dot_dimension_numbers<[1], [0], [0], [1], [0, 0, 1, 1], [], []>} : vector<8x8xbf16>, vector<8x12xbf16>, vector<8x12xf32> -> vector<8x12xf32>
    %359 = arith.addf %356, %358 : vector<8x12xf32>
    %cst_150 = arith.constant 0.000000e+00 : f32
    %360 = vector.broadcast %cst_150 : f32 to vector<8x12xf32>
    %361 = arith.maximumf %359, %360 : vector<8x12xf32>
    %362 = arith.truncf %361 : vector<8x12xf32> to vector<8x12xbf16>
    %363 = vector.extract_strided_slice %362 {offsets = [0, 0], sizes = [8, 10], strides = [1, 1]} : vector<8x12xbf16> to vector<8x10xbf16>
    %cst_151 = arith.constant dense<0.000000e+00> : vector<6x10xf32>
    %364 = tpu.matmul %19, %363, %cst_151 {dimension_numbers = #tpu.dot_dimension_numbers<[1], [0], [0], [1], [0, 0, 1, 1], [], []>} : vector<6x8xbf16>, vector<8x10xbf16>, vector<6x10xf32> -> vector<6x10xf32>
    %365 = arith.addf %26, %364 : vector<6x10xf32>
    %366 = vector.extract_strided_slice %362 {offsets = [0, 1], sizes = [8, 10], strides = [1, 1]} : vector<8x12xbf16> to vector<8x10xbf16>
    %cst_152 = arith.constant dense<0.000000e+00> : vector<6x10xf32>
    %367 = tpu.matmul %21, %366, %cst_152 {dimension_numbers = #tpu.dot_dimension_numbers<[1], [0], [0], [1], [0, 0, 1, 1], [], []>} : vector<6x8xbf16>, vector<8x10xbf16>, vector<6x10xf32> -> vector<6x10xf32>
    %368 = arith.addf %365, %367 : vector<6x10xf32>
    %369 = vector.extract_strided_slice %362 {offsets = [0, 2], sizes = [8, 10], strides = [1, 1]} : vector<8x12xbf16> to vector<8x10xbf16>
    %cst_153 = arith.constant dense<0.000000e+00> : vector<6x10xf32>
    %370 = tpu.matmul %23, %369, %cst_153 {dimension_numbers = #tpu.dot_dimension_numbers<[1], [0], [0], [1], [0, 0, 1, 1], [], []>} : vector<6x8xbf16>, vector<8x10xbf16>, vector<6x10xf32> -> vector<6x10xf32>
    %371 = arith.addf %368, %370 : vector<6x10xf32>
    %cst_154 = arith.constant dense<0.000000e+00> : vector<6xf32>
    %372 = vector.multi_reduction <add>, %371, %cst_154 [1] : vector<6x10xf32> to vector<6xf32>
    %cst_155 = arith.constant 1.000000e+01 : f32
    %373 = vector.broadcast %cst_155 : f32 to vector<6xf32>
    %374 = arith.divf %372, %373 : vector<6xf32>
    %375 = arith.index_cast %c7_i32 : i32 to index
    %c0_156 = arith.constant 0 : index
    %376 = vector.load %arg8[%375, %c0_156] : memref<8x6xf32, #tpu.memory_space<vmem>>, vector<1x6xf32>
    %377 = vector.shape_cast %376 : vector<1x6xf32> to vector<6xf32>
    %378 = vector.shape_cast %374 : vector<6xf32> to vector<1x6xf32>
    tpu.vector_store %arg8[%375, %c0_156], %378 {strides = array<i32>} : memref<8x6xf32, #tpu.memory_space<vmem>>, vector<1x6xf32>,
    %c8_i32 = arith.constant 8 : i32
    return
  }
  func.func @transform_0(%arg0: i32) -> (i32, i32, i32) {
    %c0_i32 = arith.constant 0 : i32
    %c0_i32_0 = arith.constant 0 : i32
    %c0_i32_1 = arith.constant 0 : i32
    return %arg0, %c0_i32, %c0_i32_0 : i32, i32, i32
  }
  func.func @transform_1(%arg0: i32) -> (i32, i32, i32) {
    %c0_i32 = arith.constant 0 : i32
    %c0_i32_0 = arith.constant 0 : i32
    %c0_i32_1 = arith.constant 0 : i32
    %c0_i32_2 = arith.constant 0 : i32
    return %c0_i32, %c0_i32_0, %c0_i32_1 : i32, i32, i32
  }
  func.func @transform_2(%arg0: i32) -> (i32, i32) {
    %c0_i32 = arith.constant 0 : i32
    %c0_i32_0 = arith.constant 0 : i32
    %c0_i32_1 = arith.constant 0 : i32
    return %c0_i32, %c0_i32_0 : i32, i32
  }
  func.func @transform_3(%arg0: i32) -> (i32, i32, i32) {
    %c0_i32 = arith.constant 0 : i32
    %c0_i32_0 = arith.constant 0 : i32
    %c0_i32_1 = arith.constant 0 : i32
    %c0_i32_2 = arith.constant 0 : i32
    return %c0_i32, %c0_i32_0, %c0_i32_1 : i32, i32, i32
  }
  func.func @transform_4(%arg0: i32) -> (i32, i32) {
    %c0_i32 = arith.constant 0 : i32
    %c0_i32_0 = arith.constant 0 : i32
    %c0_i32_1 = arith.constant 0 : i32
    return %c0_i32, %c0_i32_0 : i32, i32
  }
  func.func @transform_5(%arg0: i32) -> (i32, i32, i32) {
    %c0_i32 = arith.constant 0 : i32
    %c0_i32_0 = arith.constant 0 : i32
    %c0_i32_1 = arith.constant 0 : i32
    %c0_i32_2 = arith.constant 0 : i32
    return %c0_i32, %c0_i32_0, %c0_i32_1 : i32, i32, i32
  }
  func.func @transform_6(%arg0: i32) -> (i32, i32) {
    %c0_i32 = arith.constant 0 : i32
    %c0_i32_0 = arith.constant 0 : i32
    %c0_i32_1 = arith.constant 0 : i32
    return %c0_i32, %c0_i32_0 : i32, i32
  }
  func.func @transform_7(%arg0: i32) -> (i32, i32) {
    %c0_i32 = arith.constant 0 : i32
    %c0_i32_0 = arith.constant 0 : i32
    return %arg0, %c0_i32 : i32, i32
  }
}

</mosaic_0001>

<bundles_post_ra>
// kernel: _lambda_.1
= control target key start
LH: loop header
LB: loop body
LE: loop exit
PB: predicated region body
PF: predicated region fallthrough
CT: control target
= control target key end

     0   :  { %12 = vsyncpa [#allocation3], 0  ;;  %s5997_s0 = inlined_call_operand.hbm [shape: f32[16,4,16], index: 0, kind: input, shape index: {}]   ;;  %s5998_s1 = inlined_call_operand.hbm [shape: bf16[3,8,4], index: 1, kind: input, shape index: {}]   ;;  %s5999_s2 = inlined_call_operand.hbm [shape: f32[8,1], index: 2, kind: input, shape index: {}]   ;;  %s6000_s3 = inlined_call_operand.hbm [shape: bf16[3,8,8], index: 3, kind: input, shape index: {}]   ;;  %s6001_s4 = inlined_call_operand.hbm [shape: f32[8,1], index: 4, kind: input, shape index: {}]   ;;  %s6002_s5 = inlined_call_operand.vmem [shape: bf16[3,6,8], index: 5, kind: input, shape index: {}]   ;;  %s6003_s6 = inlined_call_operand.vmem [shape: f32[6,1], index: 6, kind: input, shape index: {}]   ;;  %s6004_s7 = inlined_call_operand.vmem [shape: f32[16,6], index: 7, kind: output, shape index: {}]  }
   0x1   :  { %14 = vsyncpa [#allocation3 + $0x1], 0 }
   0x2   :  { %15 = vsyncpa [#allocation5], 0 }
   0x3   :  { %16 = vsyncpa [#allocation8], 0  ;;  %s5183_s24 = smov 0   ;;  %s5185_s25 = smov 0  }
   0x4   :  { %s5187_s26 = smov 0   ;;  %s5189_s27 = smov 0  }
   0x5 LB: > { %s5202_s28 = sadd.s32 4294967295, %s5129_s27   ;;  %p42_p0 = scmp.ne.s32.totalorder %s5121_s25, %s5117_s24  ;;  %s5129_s27 = sphi %s5189_s27, %s6022_s27   ;;  %s5125_s26 = sphi %s5187_s26, %s6021_s26   ;;  %s5121_s25 = sphi %s5185_s25, %s6020_s25   ;;  %s5117_s24 = sphi %s5183_s24, %s6019_s24  }
   0x6   : > { %p6005_p1 = scmp.eq.s32.totalorder %s5202_s28, 0  ;;  %p3957_p2 = scmp.ge.s32.totalorder %s5129_s27, 1 }
   0x7   : > { %p205_p3 = scmp.lt.s32.totalorder %s5129_s27, 3  ;;  %s5131_s8 = smov [#allocation4]  }
   0x8   : > { %p5210_p4 = por %p6005_p1, %p42_p0  ;;  %s217_s9 = sshll.u32 %s5131_s8, 4  ;;  %s5218_s9 = int_to_ptr.vmem [resolvable:$true] %s217_s9 }
   0x9   : > { %p5214_p5 = pnand %p3957_p2, %p205_p3  ;;  %s5132_s11 = smov [#allocation7]  }
   0xa   : > { %s6008_s29 = scalar_select %p5210_p4, 1, 0 }
   0xb   : > { %s6009_s30 = scalar_select %p5214_p5, 1, 0 }
   0xc   : > { %p4867_p6 = pneg %p5214_p5  ;;  %s241_s12 = sshll.u32 %s5132_s11, 4  ;;  %s5228_s12 = int_to_ptr.vmem [resolvable:$true] %s241_s12 }
   0xd   : > { %s5133_s13 = smov [#allocation6]   ;;  %s4945_s17 = scalar_lea.hbm %s5998_s1, 192 }
   0xe   : > { %p5224_p7 = pnand %p4867_p6, %p6005_p1  ;;  %s5230_s14 = sshll.u32 %s5133_s13, 4  ;;  %s232_s14 = int_to_ptr.vmem [resolvable:$true] %s5230_s14 }
   0xf   : > { %p4946_p8 = scmp.ne.s32.totalorder %s5998_s1, %s4945_s17  ;;  %p4952_p12 = scmp.lt.u32.totalorder %s4945_s17, %s5998_s1 }
  0x10   : > { %p5240_p9 = pneg %p5224_p7 }
  0x12   : > { %p4948_p10 = pnand %p5240_p9, %p4946_p8 }
  0x14   : > { %p4949_p11 = pneg %p4948_p10 }
  0x16   : > { %p4954_p13 = pnand %p4952_p12, %p4949_p11 }
  0x18   : > { %4957 = shalt.err (!%p4954_p13)
}
  0x19   : > { %s4958_s23 = scalar_lea.vmem %s5218_s9, 192  ;;  %p4966_p6 = scmp.lt.s32.totalorder %s5218_s9, %s5218_s9 }
  0x1a   : > { %p4959_p0 = scmp.ne.s32.totalorder %s5218_s9, %s4958_s23  ;;  %p4967_p1 = scmp.lt.s32.totalorder %s4958_s23, %s4958_s23 }
  0x1c   : > { %p4961_p2 = pnand %p4959_p0, %p5240_p9  ;;  %p4968_p8 = por %p4967_p1, %p4966_p6 }
  0x1e   : > { %p4962_p3 = pneg %p4961_p2 }
  0x20   : > { %p4969_p10 = pnand %p4968_p8, %p4962_p3 }
  0x22   : > { %4972 = shalt.err (!%p4969_p10)
}
  0x23   : > { %s5134_s24 = smov 64   ;;  %s5135_s8 = smov 4  }
  0x24   : > { %4870 = dma.hbm_to_vmem [thread:$0]  (!%p5224_p7), %s5998_s1, 192, %s5218_s9, [#allocation5], %s5134_s24, %s5134_s24, %s5135_s8  }
  0x25   : > { %s4973_s17 = scalar_lea.hbm %s6000_s3, 192 }
  0x26   : > { %p4974_p1 = scmp.ne.s32.totalorder %s6000_s3, %s4973_s17  ;;  %p4980_p13 = scmp.lt.u32.totalorder %s4973_s17, %s6000_s3 }
  0x28   : > { %p4976_p11 = pnand %p4974_p1, %p5240_p9 }
  0x2a   : > { %p4977_p12 = pneg %p4976_p11 }
  0x2c   : > { %p4982_p0 = pnand %p4980_p13, %p4977_p12 }
  0x2e   : > { %4985 = shalt.err (!%p4982_p0)
}
  0x2f   : > { %s4986_s9 = scalar_lea.vmem %s5228_s12, 192  ;;  %p4994_p8 = scmp.lt.s32.totalorder %s5228_s12, %s5228_s12 }
  0x30   : > { %p4987_p2 = scmp.ne.s32.totalorder %s5228_s12, %s4986_s9  ;;  %p4995_p10 = scmp.lt.s32.totalorder %s4986_s9, %s4986_s9 }
  0x32   : > { %p4989_p3 = pnand %p4987_p2, %p5240_p9  ;;  %p4996_p1 = por %p4995_p10, %p4994_p8 }
  0x34   : > { %p4990_p6 = pneg %p4989_p3 }
  0x36   : > { %p4997_p11 = pnand %p4996_p1, %p4990_p6 }
  0x38   : > { %5000 = shalt.err (!%p4997_p11)
}
  0x39   : > { %4876 = dma.hbm_to_vmem [thread:$0]  (!%p5224_p7), %s6000_s3, 192, %s5228_s12, [#allocation8], %s5134_s24, %s5134_s24, %s5135_s8  }
  0x3a   : > { %s5001_s16 = scalar_lea.hbm %s5999_s2, 128 }
  0x3b   : > { %p5002_p12 = scmp.ne.s32.totalorder %s5999_s2, %s5001_s16  ;;  %p5008_p2 = scmp.lt.u32.totalorder %s5001_s16, %s5999_s2 }
  0x3d   : > { %p5004_p13 = pnand %p5002_p12, %p5240_p9 }
  0x3f   : > { %p5005_p0 = pneg %p5004_p13 }
  0x41   : > { %p5010_p3 = pnand %p5008_p2, %p5005_p0 }
  0x43   : > { %5013 = shalt.err (!%p5010_p3)
}
  0x44   : > { %s5014_s22 = scalar_lea.vmem %s232_s14, 128  ;;  %p5022_p1 = scmp.lt.s32.totalorder %s232_s14, %s232_s14 }
  0x45   : > { %p5015_p6 = scmp.ne.s32.totalorder %s232_s14, %s5014_s22  ;;  %p5023_p11 = scmp.lt.s32.totalorder %s5014_s22, %s5014_s22 }
  0x47   : > { %p5017_p8 = pnand %p5015_p6, %p5240_p9  ;;  %p5024_p4 = por %p5023_p11, %p5022_p1 }
  0x49   : > { %p5018_p10 = pneg %p5017_p8 }
  0x4b   : > { %p5025_p5 = pnand %p5024_p4, %p5018_p10 }
  0x4d   : > { %5028 = shalt.err (!%p5025_p5)
}
  0x4e   : > { %4873 = dma.hbm_to_vmem [thread:$0]  (!%p5224_p7), %s5999_s2, 128, %s232_s14, [#allocation5]  }
  0x4f   : > { %s5136_s23 = smov [#allocation9]   ;;  %s5029_s16 = scalar_lea.hbm %s6001_s4, 128 }
  0x50   : > { %s255_s11 = sshll.u32 %s5136_s23, 4  ;;  %p5030_p12 = scmp.ne.s32.totalorder %s6001_s4, %s5029_s16  ;;  %s256_s11 = int_to_ptr.vmem [resolvable:$true] %s255_s11 }
  0x51   : > { %p5036_p13 = scmp.lt.u32.totalorder %s5029_s16, %s6001_s4 }
  0x52   : > { %p5032_p4 = pnand %p5030_p12, %p5240_p9 }
  0x54   : > { %p5033_p5 = pneg %p5032_p4 }
  0x56   : > { %p5038_p0 = pnand %p5036_p13, %p5033_p5 }
  0x58   : > { %5041 = shalt.err (!%p5038_p0)
}
  0x59   : > { %s5042_s14 = scalar_lea.vmem %s256_s11, 128  ;;  %p5050_p8 = scmp.lt.s32.totalorder %s256_s11, %s256_s11 }
  0x5a   : > { %p5043_p2 = scmp.ne.s32.totalorder %s256_s11, %s5042_s14  ;;  %p5051_p10 = scmp.lt.s32.totalorder %s5042_s14, %s5042_s14 }
  0x5c   : > { %p5045_p3 = pnand %p5043_p2, %p5240_p9  ;;  %p5052_p1 = por %p5051_p10, %p5050_p8 }
  0x5e   : > { %p5046_p6 = pneg %p5045_p3 }
  0x60   : > { %p5053_p11 = pnand %p5052_p1, %p5046_p6 }
  0x62   : > { %5056 = shalt.err (!%p5053_p11)
}
  0x63   : > { %4879 = dma.hbm_to_vmem [thread:$0]  (!%p5224_p7), %s6001_s4, 128, %s256_s11, [#allocation8]  }
  0x64   : > { %s5328_s20 = sadd.s32 1, %s5129_s27   ;;  %s29_s9 = sadd.s32 1, %s5125_s26 }
  0x65   : > { %s26_s23 = ssub.s32 %s5129_s27, %s5328_s20  ;;  %p36_p9 = scmp.ne.s32.totalorder %s5125_s26, %s5121_s25 }
  0x66   : > { %p27_p12 = scmp.eq.s32.totalorder %s26_s23, 0  ;;  %p37_p4 = scmp.eq.s32.totalorder %s5129_s27, 0 }
  0x67   : > { %p4888_p5 = scmp.lt.s32.totalorder %s5129_s27, 2  ;;  %s272_s10 = sand.u32 1, %s5125_s26  }
  0x68   : > { %s5339_s13 = scalar_select %p27_p12, %s5125_s26, %s29_s9  }
  0x69   : > { %p38_p13 = por %p37_p4, %p36_p9  ;;  %s3963_s15 = sshll.u32 %s272_s10, 5 }
  0x6a   : > { %s4056_s16 = sshll.u32 %s5129_s27, 9  ;;  %s276_s11 = scalar_lea.vmem [#allocation2], %s3963_s15 }
  0x6b   : > { %s5345_s19 = scalar_lea.hbm %s5997_s0, %s4056_s16  ;;  %s283_s21 = sshll.u32 %s276_s11, 4  ;;  %s5351_s21 = int_to_ptr.vmem [resolvable:$true] %s283_s21 }
  0x6c   : > { %p5347_p7 = pnand %p4888_p5, %p38_p13  ;;  %s5353_s27 = scalar_lea.sflag [#allocation3], %s272_s10 }
  0x6d   : > { %s5057_s22 = scalar_lea.hbm %s5345_s19, 512  ;;  %s5062_s23 = scalar_lea.hbm %s5997_s0, 1024 }
  0x6e   : > { %p5058_p0 = scmp.ne.s32.totalorder %s5345_s19, %s5057_s22  ;;  %p5059_p2 = pneg %p5347_p7 }
  0x6f   : > { %p5063_p8 = scmp.lt.u32.totalorder %s5345_s19, %s5997_s0  ;;  %p5064_p10 = scmp.lt.u32.totalorder %s5062_s23, %s5057_s22 }
  0x70   : > { %p5060_p3 = pnand %p5059_p2, %p5058_p0  ;;  %p5066_p11 = scmp.lt.u32.totalorder %s5057_s22, %s5345_s19 }
  0x71   : > { %p5065_p1 = por %p5064_p10, %p5063_p8 }
  0x72   : > { %p5061_p6 = pneg %p5060_p3 }
  0x73   : > { %p5067_p9 = por %p5066_p11, %p5065_p1 }
  0x75   : > { %p5068_p12 = pnand %p5067_p9, %p5061_p6 }
  0x77   : > { %5071 = shalt.err (!%p5068_p12)
}
  0x78   : > { %s5072_s10 = scalar_lea.vmem %s5351_s21, 512  ;;  %s5137_s17 = smov [#allocation2]  }
  0x79   : > { %p5073_p4 = scmp.ne.s32.totalorder %s5351_s21, %s5072_s10  ;;  %s5077_s18 = sshll.u32 %s5137_s17, 4  ;;  %s5078_s18 = int_to_ptr.vmem [resolvable:$false] %s5077_s18 }
  0x7a   : > { %s5079_s11 = scalar_lea.vmem %s5078_s18, 1024  ;;  %p5080_p0 = scmp.lt.s32.totalorder %s5351_s21, %s5078_s18 }
  0x7b   : > { %p5075_p5 = pnand %p5073_p4, %p5059_p2  ;;  %p5081_p3 = scmp.lt.s32.totalorder %s5079_s11, %s5072_s10 }
  0x7d   : > { %p5076_p13 = pneg %p5075_p5  ;;  %p5082_p8 = por %p5081_p3, %p5080_p0 }
  0x7f   : > { %p5083_p10 = pnand %p5082_p8, %p5076_p13 }
  0x81   : > { %5086 = shalt.err (!%p5083_p10)
}
  0x82   : > { %4883 = dma.hbm_to_vmem [thread:$0]  (!%p5347_p7), %s5345_s19, 512, %s5351_s21, %s5353_s27, %s5134_s24, %s5134_s24, %s5135_s8  }
  0x83   : > { %p6013_p2 = scmp.ne.s32.totalorder %s6009_s30, 0 }
  0x84   : > { %s297_s22 = sand.u32 (!%p6013_p2), 1, %s5121_s25   ;;  %p6014_p6 = scmp.ne.s32.totalorder (!%p6013_p2), %s6008_s29, 0 }
  0x85   : > { %295 = sbr.rel (%p6013_p2) target bundleno = 4008 (0xfa8), region = 48  ;;  %s3967_s12 = sshll.u32 (!%p6013_p2), %s297_s22, 5 }
  0x86   : > { %s298_s9 = scalar_lea.sflag (!%p6013_p2), [#allocation3], %s297_s22  ;;  %s5387_s23 = scalar_lea.vmem (!%p6013_p2), [#allocation2], %s3967_s12 }
  0x8c   : > { %5104 = dma.done.wait (%p6014_p6), %s298_s9, 512  }
  0x8d   : > { %5106 = vsyncadd (%p6014_p6), %s298_s9, 4294966784  ;;  %p6015_p1 = scmp.eq.s32.totalorder %s5202_s28, 0 }
  0x8f   : > { %5108 = dma.done.wait (%p6015_p1), [#allocation5], 320   ;;  %p6016_p7 = pmov %p6015_p1 }
  0x90   : > { %p6017_p11 = pmov %p6015_p1 }
  0x91   : > { %5110 = vsyncadd (%p6016_p7), [#allocation5], 4294966976 }
  0x92   : > { %5112 = dma.done.wait (%p6017_p11), [#allocation8], 320   ;;  %p6018_p9 = pmov %p6015_p1 }
  0x93   : > { %v5138_v0 = vmov 0.0   ;;  %vm5139_vm0 = vmmov 0   ;;  %v386_v1 = vld [vmem:[%s5387_s23] sm:$0xf]  ;;  %vm392_vm1 = vcmask 1041408   ;;  %s5140_s29 = smov 127  }
  0x94   : > { %5114 = vsyncadd (%p6018_p9), [#allocation8], 4294966976  ;;  %4201 = vmatprep.subr.bf16.mxu0 %v5138_v0  ;;  %4219 = vmatprep.subr.bf16.mxu1 %v5138_v0  ;;  %v387_v2 = vpack.c.bf16 %v386_v1, %v386_v1  ;;  %v5410_v4 = vld [vmem:[#allocation4] sm:$0xf]  ;;  %vm388_vm2 = vcmask 31744   ;;  %v358_v5 = vld [vmem:[#allocation6] sm:$0xff] }
  0x95   : > { %4203 = vmatprep.mubr.msk.bf16.mxu0 %vm5139_vm0, %v5138_v0  ;;  %4221 = vmatprep.mubr.msk.bf16.mxu1 %vm5139_vm0, %v5138_v0  ;;  %s5141_s30 = smov 126   ;;  %v5142_v6 = vmov 0   ;;  %v5419_v9 = vld [vmem:[#allocation4 + $0x4] sm:$0xf]  ;;  %v5428_v12 = vld [vmem:[#allocation4 + $0x8] sm:$0xf] }
  0x96   : > { %438 = vrot.lane.b32.xlu0 %v387_v2, %s5140_s29  ;;  %v394_v3 = vsel %vm392_vm1, %v387_v2, 0  ;;  %4936 = vset.pattern.permute.xlu1 %v5142_v6  ;;  %vm542_vm3 = vcmask 1043456   ;;  %v3984_v20 = vld [vmem:[%s5387_s23 + $0x4] sm:$0xf]  ;;  %v5441_v24 = vld [vmem:[#allocation7] sm:$0xf] }
  0x97   : > { %4202 = vmatpush3.bf16.msra.mxu0 %v394_v3  ;;  %361 = vperm.xlu1 %4936, %v358_v5   ;;  %v852_v23 = vpack.c.bf16 %v3984_v20, %v3984_v20  ;;  %vm538_vm4 = vcmask 64512   ;;  %v369_v25 = vld [vmem:[#allocation9] sm:$0xff]  ;;  %v5451_v29 = vld [vmem:[#allocation7 + $0x4] sm:$0xf]  ;;  %v5460_v31 = vld [vmem:[#allocation7 + $0x8] sm:$0xf] }
  0x98   : > { %4207 = vmatprep.subr.bf16.mxu0 %v5138_v0  ;;  %4937 = vset.pattern.permute.xlu0 %v5142_v6  ;;  %v5493_v46 = vld [vmem:[%s6002_s5] sm:$0x7]  ;;  %v3994_v53 = vld [vmem:[%s5387_s23 + $0x8] sm:$0xf]  ;;  %v5510_v59 = vld [vmem:[%s6002_s5 + $0x4] sm:$0x7] }
  0x99   : > { %v854_v32 = vsel %vm392_vm1, %v852_v23, 0  ;;  %v1281_v55 = vpack.c.bf16 %v3994_v53, %v3994_v53  ;;  %v5522_v61 = vld [vmem:[%s6002_s5 + $0x8] sm:$0x7]  ;;  %vm834_vm5 = vcmask 78848   ;;  %p348_p12 = scmp.lt.s32.totalorder %s5202_s28, 1  ;;  %vm848_vm6 = vcmask 40960  }
  0x9a   : > { %487 = vrot.lane.b32.xlu0 %v387_v2, %s5141_s30  ;;  %4204 = vmatmul.mubr.msk.bf16.vlgmr.msra.gmra.mrb[0].mxu0 %vm388_vm2, %v5410_v4 }
  0x9b   : > { %4209 = vmatprep.mubr.msk.bf16.mxu0 %vm5139_vm0, %v5138_v0  ;;  %v1283_v5 = vsel %vm392_vm1, %v1281_v55, 0  ;;  %s6024_s28 = smov (!%p348_p12, %s5202_s28), 1 }
  0x9c   : > { %s3972_s18 = sshll.u32 %s6024_s28, 3 }
  0x9d   : > { %s5965_s12 = scalar_lea.vmem %s6004_s7, %s3972_s18 }
 0x108   : > { %v439_v7 = vpop.permute.xlu0 %438 }
 0x109   : > { %v444_v8 = vsel %vm392_vm1, %v439_v7, 0 }
 0x10a   : > { %4208 = vmatpush3.bf16.msra.mxu0 %v444_v8 }
 0x10b   : > { %4213 = vmatprep.subr.bf16.mxu0 %v5138_v0 }
 0x10c   : > { %v488_v10 = vpop.permute.xlu0 %487 }
 0x10d   : > { %4210 = vmatmul.mubr.msk.bf16.vlgmr.msra.gmra.mrb[0].mxu0 %vm388_vm2, %v5419_v9  ;;  %v493_v11 = vsel %vm392_vm1, %v488_v10, 0 }
 0x10e   : > { %4214 = vmatpush3.bf16.msra.mxu0 %v493_v11  ;;  %4215 = vmatprep.mubr.msk.bf16.mxu0 %vm5139_vm0, %v5138_v0 }
 0x10f   : > { %4237 = vmatprep.subr.bf16.mxu0 %v5138_v0 }
 0x116   : > { %v5434_v13 = vpop.permute.xlu1 %361 }
 0x119   : > { %4216 = vmatmul.mubr.msk.bf16.vlgmr.msra.gmra.mrb[0].mxu0 %vm388_vm2, %v5428_v12 }
 0x11a   : > { %4239 = vmatprep.mubr.msk.bf16.mxu0 %vm5139_vm0, %v5138_v0 }
 0x1ec   : > { %v529_v14 = vpop.f32.mrb[0].mxu0 }
 0x1ed   : > { %v4633_v15 = vadd.f32 %v529_v14, %v5434_v13  ;;  %v4217_v16 = vpop.f32.mrb[1].mxu0 }
 0x1ee   : > { %v532_v17 = vpop.f32.mrb[2].mxu0 }
 0x1ef   : > { %v536_v18 = vmax.f32 %v4633_v15, 0.0  ;;  %v4218_v19 = vpop.f32.mrb[3].mxu0 }
 0x1f1   : > { %v537_v21 = vpack.c.bf16 %v536_v18, %v536_v18 }
 0x1f3   : > { %637 = vrot.lane.b32.xlu0 %v537_v21, %s5141_s30  ;;  %588 = vrot.lane.b32.xlu1 %v537_v21, %s5140_s29  ;;  %v544_v22 = vsel %vm542_vm3, %v537_v21, 0 }
 0x1f4   : > { %4220 = vmatpush3.bf16.msra.mxu1 %v544_v22 }
 0x1f5   : > { %4225 = vmatprep.subr.bf16.mxu1 %v5138_v0 }
 0x1f7   : > { %898 = vrot.lane.b32.xlu1 %v852_v23, %s5140_s29  ;;  %944 = vrot.lane.b32.xlu0 %v852_v23, %s5141_s30 }
 0x1f8   : > { %4222 = vmatmul.mubr.msk.bf16.vlgmr.msra.gmra.mrb[0].mxu1 %vm538_vm4, %v5441_v24 }
 0x1f9   : > { %4227 = vmatprep.mubr.msk.bf16.mxu1 %vm5139_vm0, %v5138_v0 }
 0x1fb   : > { %372 = vperm.xlu1 %4936, %v369_v25  }
 0x265   : > { %v589_v26 = vpop.permute.xlu1 %588  ;;  %v638_v28 = vpop.permute.xlu0 %637 }
 0x266   : > { %v594_v27 = vsel %vm542_vm3, %v589_v26, 0  ;;  %v643_v30 = vsel %vm542_vm3, %v638_v28, 0 }
 0x267   : > { %4226 = vmatpush3.bf16.msra.mxu1 %v594_v27 }
 0x268   : > { %4231 = vmatprep.subr.bf16.mxu1 %v5138_v0 }
 0x269   : > { %v899_v33 = vpop.permute.xlu1 %898  ;;  %v945_v35 = vpop.permute.xlu0 %944 }
 0x26a   : > { %4228 = vmatmul.mubr.msk.bf16.vlgmr.msra.gmra.mrb[0].mxu1 %vm538_vm4, %v5451_v29  ;;  %v901_v34 = vsel %vm392_vm1, %v899_v33, 0  ;;  %v947_v36 = vsel %vm392_vm1, %v945_v35, 0 }
 0x26b   : > { %4232 = vmatpush3.bf16.msra.mxu1 %v643_v30  ;;  %4233 = vmatprep.mubr.msk.bf16.mxu1 %vm5139_vm0, %v5138_v0 }
 0x26c   : > { %4255 = vmatprep.subr.bf16.mxu1 %v5138_v0 }
 0x276   : > { %4234 = vmatmul.mubr.msk.bf16.vlgmr.msra.gmra.mrb[0].mxu1 %vm538_vm4, %v5460_v31 }
 0x277   : > { %4256 = vmatpush3.bf16.msra.mxu1 %v854_v32  ;;  %4257 = vmatprep.mubr.msk.bf16.mxu1 %vm5139_vm0, %v5138_v0 }
 0x278   : > { %4261 = vmatprep.subr.bf16.mxu1 %v5138_v0 }
 0x27a   : > { %v5484_v37 = vpop.permute.xlu1 %372 }
 0x27e   : > { %4258 = vmatmul.mubr.msk.bf16.vlgmr.msra.gmra.mrb[4].mxu1 %vm388_vm2, %v5410_v4 }
 0x27f   : > { %4262 = vmatpush3.bf16.msra.mxu1 %v901_v34  ;;  %4263 = vmatprep.mubr.msk.bf16.mxu1 %vm5139_vm0, %v5138_v0  ;;  %v4004_v34 = vld [vmem:[%s5387_s23 + $0xc] sm:$0xf] }
 0x280   : > { %4267 = vmatprep.subr.bf16.mxu1 %v5138_v0 }
 0x28a   : > { %4264 = vmatmul.mubr.msk.bf16.vlgmr.msra.gmra.mrb[4].mxu1 %vm388_vm2, %v5419_v9 }
 0x28b   : > { %4268 = vmatpush3.bf16.msra.mxu1 %v947_v36  ;;  %4269 = vmatprep.mubr.msk.bf16.mxu1 %vm5139_vm0, %v5138_v0  ;;  %v1710_v36 = vpack.c.bf16 %v4004_v34, %v4004_v34 }
 0x28c   : > { %4291 = vmatprep.subr.bf16.mxu1 %v5138_v0 }
 0x296   : > { %4270 = vmatmul.mubr.msk.bf16.vlgmr.msra.gmra.mrb[4].mxu1 %vm388_vm2, %v5428_v12 }
 0x297   : > { %4293 = vmatprep.mubr.msk.bf16.mxu1 %vm5139_vm0, %v5138_v0 }
 0x349   : > { %v679_v38 = vpop.f32.mrb[0].mxu1 }
 0x34a   : > { %v4634_v39 = vadd.f32 %v679_v38, %v5484_v37  ;;  %v4235_v40 = vpop.f32.mrb[1].mxu1 }
 0x34b   : > { %v682_v41 = vpop.f32.mrb[2].mxu1 }
 0x34c   : > { %v686_v42 = vmax.f32 %v4634_v39, 0.0  ;;  %v4236_v43 = vpop.f32.mrb[3].mxu1 }
 0x34e   : > { %v687_v44 = vpack.c.bf16 %v686_v42, %v686_v42 }
 0x350   : > { %785 = vrot.lane.b32.xlu1 %v687_v44, %s5141_s30  ;;  %736 = vrot.lane.b32.xlu0 %v687_v44, %s5140_s29  ;;  %v692_v45 = vsel %vm542_vm3, %v687_v44, 0 }
 0x351   : > { %4238 = vmatpush3.bf16.msra.mxu0 %v692_v45 }
 0x352   : > { %4243 = vmatprep.subr.bf16.mxu0 %v5138_v0 }
 0x354   : > { %4240 = vmatmul.mubr.msk.bf16.vlgmr.msra.gmra.mrb[4].mxu0 %vm538_vm4, %v5493_v46 }
 0x355   : > { %4245 = vmatprep.mubr.msk.bf16.mxu0 %vm5139_vm0, %v5138_v0 }
 0x369   : > { %v983_v47 = vpop.f32.mrb[4].mxu1 }
 0x36a   : > { %v4636_v48 = vadd.f32 %v983_v47, %v5434_v13  ;;  %v4271_v49 = vpop.f32.mrb[5].mxu1 }
 0x36b   : > { %v986_v50 = vpop.f32.mrb[6].mxu1 }
 0x36c   : > { %v990_v51 = vmax.f32 %v4636_v48, 0.0  ;;  %v4272_v52 = vpop.f32.mrb[7].mxu1  ;;  %v1712_v48 = vsel %vm392_vm1, %v1710_v36, 0 }
 0x36e   : > { %v991_v54 = vpack.c.bf16 %v990_v51, %v990_v51 }
 0x370   : > { %1083 = vrot.lane.b32.xlu1 %v991_v54, %s5141_s30  ;;  %1037 = vrot.lane.b32.xlu0 %v991_v54, %s5140_s29  ;;  %v993_v62 = vsel %vm542_vm3, %v991_v54, 0 }
 0x374   : > { %1327 = vrot.lane.b32.xlu0 %v1281_v55, %s5140_s29  ;;  %1373 = vrot.lane.b32.xlu1 %v1281_v55, %s5141_s30 }
 0x3c2   : > { %v737_v56 = vpop.permute.xlu0 %736  ;;  %v786_v58 = vpop.permute.xlu1 %785 }
 0x3c3   : > { %v742_v57 = vsel %vm542_vm3, %v737_v56, 0  ;;  %v791_v60 = vsel %vm542_vm3, %v786_v58, 0 }
 0x3c4   : > { %4244 = vmatpush3.bf16.msra.mxu0 %v742_v57 }
 0x3c5   : > { %4249 = vmatprep.subr.bf16.mxu0 %v5138_v0 }
 0x3c7   : > { %4246 = vmatmul.mubr.msk.bf16.vlgmr.msra.gmra.mrb[4].mxu0 %vm538_vm4, %v5510_v59 }
 0x3c8   : > { %4250 = vmatpush3.bf16.msra.mxu0 %v791_v60  ;;  %4251 = vmatprep.mubr.msk.bf16.mxu0 %vm5139_vm0, %v5138_v0 }
 0x3c9   : > { %4273 = vmatprep.subr.bf16.mxu0 %v5138_v0 }
 0x3d3   : > { %4252 = vmatmul.mubr.msk.bf16.vlgmr.msra.gmra.mrb[4].mxu0 %vm538_vm4, %v5522_v61 }
 0x3d4   : > { %4274 = vmatpush3.bf16.msra.mxu0 %v993_v62  ;;  %4275 = vmatprep.mubr.msk.bf16.mxu0 %vm5139_vm0, %v5138_v0 }
 0x3d5   : > { %4279 = vmatprep.subr.bf16.mxu0 %v5138_v0 }
 0x3db   : > { %4276 = vmatmul.mubr.msk.bf16.vlgmr.msra.gmra.mrb[8].mxu0 %vm538_vm4, %v5441_v24 }
 0x3dc   : > { %4281 = vmatprep.mubr.msk.bf16.mxu0 %vm5139_vm0, %v5138_v0 }
 0x3e2   : > { %v1038_v63 = vpop.permute.xlu0 %1037  ;;  %v1084_v2 = vpop.permute.xlu1 %1083 }
 0x3e3   : > { %v1040_v1 = vsel %vm542_vm3, %v1038_v63, 0  ;;  %v1086_v3 = vsel %vm542_vm3, %v1084_v2, 0 }
 0x3e4   : > { %4280 = vmatpush3.bf16.msra.mxu0 %v1040_v1 }
 0x3e5   : > { %4285 = vmatprep.subr.bf16.mxu0 %v5138_v0 }
 0x3e6   : > { %v1328_v6 = vpop.permute.xlu0 %1327  ;;  %v1374_v8 = vpop.permute.xlu1 %1373 }
 0x3e7   : > { %4282 = vmatmul.mubr.msk.bf16.vlgmr.msra.gmra.mrb[8].mxu0 %vm538_vm4, %v5451_v29  ;;  %v1330_v7 = vsel %vm392_vm1, %v1328_v6, 0  ;;  %v1376_v10 = vsel %vm392_vm1, %v1374_v8, 0 }
 0x3e8   : > { %4286 = vmatpush3.bf16.msra.mxu0 %v1086_v3  ;;  %4287 = vmatprep.mubr.msk.bf16.mxu0 %vm5139_vm0, %v5138_v0 }
 0x3e9   : > { %4309 = vmatprep.subr.bf16.mxu0 %v5138_v0 }
 0x3f3   : > { %4288 = vmatmul.mubr.msk.bf16.vlgmr.msra.gmra.mrb[8].mxu0 %vm538_vm4, %v5460_v31 }
 0x3f4   : > { %4310 = vmatpush3.bf16.msra.mxu0 %v1283_v5  ;;  %4311 = vmatprep.mubr.msk.bf16.mxu0 %vm5139_vm0, %v5138_v0 }
 0x3f5   : > { %4315 = vmatprep.subr.bf16.mxu0 %v5138_v0 }
 0x3fb   : > { %4312 = vmatmul.mubr.msk.bf16.vlgmr.msra.gmra.mrb[12].mxu0 %vm388_vm2, %v5410_v4 }
 0x3fc   : > { %4316 = vmatpush3.bf16.msra.mxu0 %v1330_v7  ;;  %4317 = vmatprep.mubr.msk.bf16.mxu0 %vm5139_vm0, %v5138_v0 }
 0x3fd   : > { %4321 = vmatprep.subr.bf16.mxu0 %v5138_v0 }
 0x407   : > { %4318 = vmatmul.mubr.msk.bf16.vlgmr.msra.gmra.mrb[12].mxu0 %vm388_vm2, %v5419_v9 }
 0x408   : > { %4322 = vmatpush3.bf16.msra.mxu0 %v1376_v10  ;;  %4323 = vmatprep.mubr.msk.bf16.mxu0 %vm5139_vm0, %v5138_v0 }
 0x409   : > { %4345 = vmatprep.subr.bf16.mxu0 %v5138_v0 }
 0x413   : > { %4324 = vmatmul.mubr.msk.bf16.vlgmr.msra.gmra.mrb[12].mxu0 %vm388_vm2, %v5428_v12 }
 0x414   : > { %4347 = vmatprep.mubr.msk.bf16.mxu0 %vm5139_vm0, %v5138_v0 }
 0x4a6   : > { %v5564_v11 = vpop.f32.mrb[4].mxu0 }
 0x4a7   : > { %v4253_v14 = vpop.f32.mrb[5].mxu0 }
 0x4a8   : > { %v830_v15 = vpop.f32.mrb[6].mxu0 }
 0x4a9   : > { %v4254_v16 = vpop.f32.mrb[7].mxu0  ;;  %v4014_v15 = vld [vmem:[%s5387_s23 + $0x10] sm:$0xf] }
 0x4c6   : > { %v1122_v17 = vpop.f32.mrb[8].mxu0 }
 0x4c7   : > { %v4637_v18 = vadd.f32 %v1122_v17, %v5484_v37  ;;  %v4289_v19 = vpop.f32.mrb[9].mxu0  ;;  %v2139_v17 = vpack.c.bf16 %v4014_v15, %v4014_v15 }
 0x4c8   : > { %v1125_v20 = vpop.f32.mrb[10].mxu0 }
 0x4c9   : > { %v1129_v21 = vmax.f32 %v4637_v18, 0.0  ;;  %v4290_v22 = vpop.f32.mrb[11].mxu0 }
 0x4cb   : > { %v1130_v23 = vpack.c.bf16 %v1129_v21, %v1129_v21 }
 0x4cd   : > { %1222 = vrot.lane.b32.xlu1 %v1130_v23, %s5141_s30  ;;  %1176 = vrot.lane.b32.xlu0 %v1130_v23, %s5140_s29  ;;  %v1132_v25 = vsel %vm542_vm3, %v1130_v23, 0 }
 0x4ce   : > { %4292 = vmatpush3.bf16.msra.mxu1 %v1132_v25 }
 0x4cf   : > { %4297 = vmatprep.subr.bf16.mxu1 %v5138_v0 }
 0x4d1   : > { %4294 = vmatmul.mubr.msk.bf16.vlgmr.msra.gmra.mrb[8].mxu1 %vm538_vm4, %v5493_v46 }
 0x4d2   : > { %4299 = vmatprep.mubr.msk.bf16.mxu1 %vm5139_vm0, %v5138_v0 }
 0x4e6   : > { %v1412_v26 = vpop.f32.mrb[12].mxu0 }
 0x4e7   : > { %v4639_v27 = vadd.f32 %v1412_v26, %v5434_v13  ;;  %v4325_v28 = vpop.f32.mrb[13].mxu0 }
 0x4e8   : > { %v1415_v30 = vpop.f32.mrb[14].mxu0  ;;  %v2141_v28 = vsel %vm392_vm1, %v2139_v17, 0 }
 0x4e9   : > { %v1419_v32 = vmax.f32 %v4639_v27, 0.0  ;;  %v4326_v33 = vpop.f32.mrb[15].mxu0 }
 0x4eb   : > { %v1420_v35 = vpack.c.bf16 %v1419_v32, %v1419_v32 }
 0x4ed   : > { %1512 = vrot.lane.b32.xlu1 %v1420_v35, %s5141_s30  ;;  %1466 = vrot.lane.b32.xlu0 %v1420_v35, %s5140_s29  ;;  %v1422_v42 = vsel %vm542_vm3, %v1420_v35, 0 }
 0x4f1   : > { %1756 = vrot.lane.b32.xlu0 %v1710_v36, %s5140_s29  ;;  %1802 = vrot.lane.b32.xlu1 %v1710_v36, %s5141_s30 }
 0x53f   : > { %v1177_v38 = vpop.permute.xlu0 %1176  ;;  %v1223_v40 = vpop.permute.xlu1 %1222 }
 0x540   : > { %v1179_v39 = vsel %vm542_vm3, %v1177_v38, 0  ;;  %v1225_v41 = vsel %vm542_vm3, %v1223_v40, 0 }
 0x541   : > { %4298 = vmatpush3.bf16.msra.mxu1 %v1179_v39 }
 0x542   : > { %4303 = vmatprep.subr.bf16.mxu1 %v5138_v0 }
 0x544   : > { %4300 = vmatmul.mubr.msk.bf16.vlgmr.msra.gmra.mrb[8].mxu1 %vm538_vm4, %v5510_v59 }
 0x545   : > { %4304 = vmatpush3.bf16.msra.mxu1 %v1225_v41  ;;  %4305 = vmatprep.mubr.msk.bf16.mxu1 %vm5139_vm0, %v5138_v0 }
 0x546   : > { %4327 = vmatprep.subr.bf16.mxu1 %v5138_v0 }
 0x550   : > { %4306 = vmatmul.mubr.msk.bf16.vlgmr.msra.gmra.mrb[8].mxu1 %vm538_vm4, %v5522_v61 }
 0x551   : > { %4328 = vmatpush3.bf16.msra.mxu1 %v1422_v42  ;;  %4329 = vmatprep.mubr.msk.bf16.mxu1 %vm5139_vm0, %v5138_v0 }
 0x552   : > { %4333 = vmatprep.subr.bf16.mxu1 %v5138_v0 }
 0x558   : > { %4330 = vmatmul.mubr.msk.bf16.vlgmr.msra.gmra.mrb[12].mxu1 %vm538_vm4, %v5441_v24 }
 0x559   : > { %4335 = vmatprep.mubr.msk.bf16.mxu1 %vm5139_vm0, %v5138_v0 }
 0x55f   : > { %v1467_v43 = vpop.permute.xlu0 %1466  ;;  %v1513_v45 = vpop.permute.xlu1 %1512 }
 0x560   : > { %v1469_v44 = vsel %vm542_vm3, %v1467_v43, 0  ;;  %v1515_v47 = vsel %vm542_vm3, %v1513_v45, 0 }
 0x561   : > { %4334 = vmatpush3.bf16.msra.mxu1 %v1469_v44 }
 0x562   : > { %4339 = vmatprep.subr.bf16.mxu1 %v5138_v0 }
 0x563   : > { %v1757_v49 = vpop.permute.xlu0 %1756  ;;  %v1803_v51 = vpop.permute.xlu1 %1802 }
 0x564   : > { %4336 = vmatmul.mubr.msk.bf16.vlgmr.msra.gmra.mrb[12].mxu1 %vm538_vm4, %v5451_v29  ;;  %v1759_v50 = vsel %vm392_vm1, %v1757_v49, 0  ;;  %v1805_v52 = vsel %vm392_vm1, %v1803_v51, 0 }
 0x565   : > { %4340 = vmatpush3.bf16.msra.mxu1 %v1515_v47  ;;  %4341 = vmatprep.mubr.msk.bf16.mxu1 %vm5139_vm0, %v5138_v0 }
 0x566   : > { %4363 = vmatprep.subr.bf16.mxu1 %v5138_v0 }
 0x570   : > { %4342 = vmatmul.mubr.msk.bf16.vlgmr.msra.gmra.mrb[12].mxu1 %vm538_vm4, %v5460_v31 }
 0x571   : > { %4364 = vmatpush3.bf16.msra.mxu1 %v1712_v48  ;;  %4365 = vmatprep.mubr.msk.bf16.mxu1 %vm5139_vm0, %v5138_v0 }
 0x572   : > { %4369 = vmatprep.subr.bf16.mxu1 %v5138_v0 }
 0x578   : > { %4366 = vmatmul.mubr.msk.bf16.vlgmr.msra.gmra.mrb[16].mxu1 %vm388_vm2, %v5410_v4 }
 0x579   : > { %4370 = vmatpush3.bf16.msra.mxu1 %v1759_v50  ;;  %4371 = vmatprep.mubr.msk.bf16.mxu1 %vm5139_vm0, %v5138_v0 }
 0x57a   : > { %4375 = vmatprep.subr.bf16.mxu1 %v5138_v0 }
 0x584   : > { %4372 = vmatmul.mubr.msk.bf16.vlgmr.msra.gmra.mrb[16].mxu1 %vm388_vm2, %v5419_v9 }
 0x585   : > { %4376 = vmatpush3.bf16.msra.mxu1 %v1805_v52  ;;  %4377 = vmatprep.mubr.msk.bf16.mxu1 %vm5139_vm0, %v5138_v0 }
 0x586   : > { %4399 = vmatprep.subr.bf16.mxu1 %v5138_v0 }
 0x590   : > { %4378 = vmatmul.mubr.msk.bf16.vlgmr.msra.gmra.mrb[16].mxu1 %vm388_vm2, %v5428_v12 }
 0x591   : > { %4401 = vmatprep.mubr.msk.bf16.mxu1 %vm5139_vm0, %v5138_v0 }
 0x623   : > { %v5629_v53 = vpop.f32.mrb[8].mxu1 }
 0x624   : > { %v4307_v54 = vpop.f32.mrb[9].mxu1 }
 0x625   : > { %v1264_v55 = vpop.f32.mrb[10].mxu1 }
 0x626   : > { %v4308_v56 = vpop.f32.mrb[11].mxu1 }
 0x627   : > { %v4024_v56 = vld [vmem:[%s5387_s23 + $0x14] sm:$0xf] }
 0x643   : > { %v1551_v57 = vpop.f32.mrb[12].mxu1 }
 0x644   : > { %v4640_v58 = vadd.f32 %v1551_v57, %v5484_v37  ;;  %v4343_v60 = vpop.f32.mrb[13].mxu1 }
 0x645   : > { %v1554_v62 = vpop.f32.mrb[14].mxu1 }
 0x646   : > { %v1558_v63 = vmax.f32 %v4640_v58, 0.0  ;;  %v4344_v1 = vpop.f32.mrb[15].mxu1  ;;  %v2568_v58 = vpack.c.bf16 %v4024_v56, %v4024_v56 }
 0x648   : > { %v1559_v2 = vpack.c.bf16 %v1558_v63, %v1558_v63 }
 0x64a   : > { %1651 = vrot.lane.b32.xlu1 %v1559_v2, %s5141_s30  ;;  %1605 = vrot.lane.b32.xlu0 %v1559_v2, %s5140_s29  ;;  %v1561_v3 = vsel %vm542_vm3, %v1559_v2, 0 }
 0x64b   : > { %4346 = vmatpush3.bf16.msra.mxu0 %v1561_v3 }
 0x64c   : > { %4351 = vmatprep.subr.bf16.mxu0 %v5138_v0 }
 0x64e   : > { %4348 = vmatmul.mubr.msk.bf16.vlgmr.msra.gmra.mrb[16].mxu0 %vm538_vm4, %v5493_v46 }
 0x64f   : > { %4353 = vmatprep.mubr.msk.bf16.mxu0 %vm5139_vm0, %v5138_v0 }
 0x663   : > { %v1841_v5 = vpop.f32.mrb[16].mxu1 }
 0x664   : > { %v4642_v6 = vadd.f32 %v1841_v5, %v5434_v13  ;;  %v4379_v7 = vpop.f32.mrb[17].mxu1 }
 0x665   : > { %v1844_v8 = vpop.f32.mrb[18].mxu1 }
 0x666   : > { %v1848_v10 = vmax.f32 %v4642_v6, 0.0  ;;  %v4380_v14 = vpop.f32.mrb[19].mxu1  ;;  %v2570_v8 = vsel %vm392_vm1, %v2568_v58, 0 }
 0x668   : > { %v1849_v16 = vpack.c.bf16 %v1848_v10, %v1848_v10 }
 0x66a   : > { %1941 = vrot.lane.b32.xlu1 %v1849_v16, %s5141_s30  ;;  %1895 = vrot.lane.b32.xlu0 %v1849_v16, %s5140_s29  ;;  %v1851_v22 = vsel %vm542_vm3, %v1849_v16, 0 }
 0x66e   : > { %2185 = vrot.lane.b32.xlu0 %v2139_v17, %s5140_s29  ;;  %2231 = vrot.lane.b32.xlu1 %v2139_v17, %s5141_s30 }
 0x6bc   : > { %v1606_v18 = vpop.permute.xlu0 %1605  ;;  %v1652_v20 = vpop.permute.xlu1 %1651 }
 0x6bd   : > { %v1608_v19 = vsel %vm542_vm3, %v1606_v18, 0  ;;  %v1654_v21 = vsel %vm542_vm3, %v1652_v20, 0 }
 0x6be   : > { %4352 = vmatpush3.bf16.msra.mxu0 %v1608_v19 }
 0x6bf   : > { %4357 = vmatprep.subr.bf16.mxu0 %v5138_v0 }
 0x6c1   : > { %4354 = vmatmul.mubr.msk.bf16.vlgmr.msra.gmra.mrb[16].mxu0 %vm538_vm4, %v5510_v59 }
 0x6c2   : > { %4358 = vmatpush3.bf16.msra.mxu0 %v1654_v21  ;;  %4359 = vmatprep.mubr.msk.bf16.mxu0 %vm5139_vm0, %v5138_v0 }
 0x6c3   : > { %4381 = vmatprep.subr.bf16.mxu0 %v5138_v0 }
 0x6cd   : > { %4360 = vmatmul.mubr.msk.bf16.vlgmr.msra.gmra.mrb[16].mxu0 %vm538_vm4, %v5522_v61 }
 0x6ce   : > { %4382 = vmatpush3.bf16.msra.mxu0 %v1851_v22  ;;  %4383 = vmatprep.mubr.msk.bf16.mxu0 %vm5139_vm0, %v5138_v0 }
 0x6cf   : > { %4387 = vmatprep.subr.bf16.mxu0 %v5138_v0 }
 0x6d5   : > { %4384 = vmatmul.mubr.msk.bf16.vlgmr.msra.gmra.mrb[20].mxu0 %vm538_vm4, %v5441_v24 }
 0x6d6   : > { %4389 = vmatprep.mubr.msk.bf16.mxu0 %vm5139_vm0, %v5138_v0 }
 0x6dc   : > { %v1896_v23 = vpop.permute.xlu0 %1895  ;;  %v1942_v26 = vpop.permute.xlu1 %1941 }
 0x6dd   : > { %v1898_v25 = vsel %vm542_vm3, %v1896_v23, 0  ;;  %v1944_v27 = vsel %vm542_vm3, %v1942_v26, 0 }
 0x6de   : > { %4388 = vmatpush3.bf16.msra.mxu0 %v1898_v25 }
 0x6df   : > { %4393 = vmatprep.subr.bf16.mxu0 %v5138_v0 }
 0x6e0   : > { %v2186_v30 = vpop.permute.xlu0 %2185  ;;  %v2232_v33 = vpop.permute.xlu1 %2231 }
 0x6e1   : > { %4390 = vmatmul.mubr.msk.bf16.vlgmr.msra.gmra.mrb[20].mxu0 %vm538_vm4, %v5451_v29  ;;  %v2188_v32 = vsel %vm392_vm1, %v2186_v30, 0  ;;  %v2234_v34 = vsel %vm392_vm1, %v2232_v33, 0 }
 0x6e2   : > { %4394 = vmatpush3.bf16.msra.mxu0 %v1944_v27  ;;  %4395 = vmatprep.mubr.msk.bf16.mxu0 %vm5139_vm0, %v5138_v0 }
 0x6e3   : > { %4417 = vmatprep.subr.bf16.mxu0 %v5138_v0 }
 0x6ed   : > { %4396 = vmatmul.mubr.msk.bf16.vlgmr.msra.gmra.mrb[20].mxu0 %vm538_vm4, %v5460_v31 }
 0x6ee   : > { %4418 = vmatpush3.bf16.msra.mxu0 %v2141_v28  ;;  %4419 = vmatprep.mubr.msk.bf16.mxu0 %vm5139_vm0, %v5138_v0 }
 0x6ef   : > { %4423 = vmatprep.subr.bf16.mxu0 %v5138_v0 }
 0x6f5   : > { %4420 = vmatmul.mubr.msk.bf16.vlgmr.msra.gmra.mrb[24].mxu0 %vm388_vm2, %v5410_v4 }
 0x6f6   : > { %4424 = vmatpush3.bf16.msra.mxu0 %v2188_v32  ;;  %4425 = vmatprep.mubr.msk.bf16.mxu0 %vm5139_vm0, %v5138_v0 }
 0x6f7   : > { %4429 = vmatprep.subr.bf16.mxu0 %v5138_v0 }
 0x701   : > { %4426 = vmatmul.mubr.msk.bf16.vlgmr.msra.gmra.mrb[24].mxu0 %vm388_vm2, %v5419_v9 }
 0x702   : > { %4430 = vmatpush3.bf16.msra.mxu0 %v2234_v34  ;;  %4431 = vmatprep.mubr.msk.bf16.mxu0 %vm5139_vm0, %v5138_v0 }
 0x703   : > { %4453 = vmatprep.subr.bf16.mxu0 %v5138_v0 }
 0x70d   : > { %4432 = vmatmul.mubr.msk.bf16.vlgmr.msra.gmra.mrb[24].mxu0 %vm388_vm2, %v5428_v12 }
 0x70e   : > { %4455 = vmatprep.mubr.msk.bf16.mxu0 %vm5139_vm0, %v5138_v0 }
 0x7a0   : > { %v5694_v35 = vpop.f32.mrb[16].mxu0 }
 0x7a1   : > { %v4361_v36 = vpop.f32.mrb[17].mxu0 }
 0x7a2   : > { %v1693_v38 = vpop.f32.mrb[18].mxu0 }
 0x7a3   : > { %v4362_v39 = vpop.f32.mrb[19].mxu0 }
 0x7c0   : > { %v1980_v40 = vpop.f32.mrb[20].mxu0 }
 0x7c1   : > { %v4643_v41 = vadd.f32 %v1980_v40, %v5484_v37  ;;  %v4397_v42 = vpop.f32.mrb[21].mxu0  ;;  %v4034_v40 = vld [vmem:[%s5387_s23 + $0x18] sm:$0xf] }
 0x7c2   : > { %v1983_v43 = vpop.f32.mrb[22].mxu0  ;;  %v2997_v42 = vpack.c.bf16 %v4034_v40, %v4034_v40  ;;  %v4940_v40 = vld [vmem:[#allocation4 + $0x8] sm:$0xf] }
 0x7c3   : > { %v1987_v44 = vmax.f32 %v4643_v41, 0.0  ;;  %v4398_v45 = vpop.f32.mrb[23].mxu0 }
 0x7c5   : > { %v1988_v47 = vpack.c.bf16 %v1987_v44, %v1987_v44 }
 0x7c7   : > { %2080 = vrot.lane.b32.xlu1 %v1988_v47, %s5141_s30  ;;  %2034 = vrot.lane.b32.xlu0 %v1988_v47, %s5140_s29  ;;  %v1990_v48 = vsel %vm542_vm3, %v1988_v47, 0 }
 0x7c8   : > { %4400 = vmatpush3.bf16.msra.mxu1 %v1990_v48 }
 0x7c9   : > { %4405 = vmatprep.subr.bf16.mxu1 %v5138_v0 }
 0x7cb   : > { %4402 = vmatmul.mubr.msk.bf16.vlgmr.msra.gmra.mrb[20].mxu1 %vm538_vm4, %v5493_v46 }
 0x7cc   : > { %4407 = vmatprep.mubr.msk.bf16.mxu1 %vm5139_vm0, %v5138_v0 }
 0x7e0   : > { %v2270_v49 = vpop.f32.mrb[24].mxu0 }
 0x7e1   : > { %v4645_v50 = vadd.f32 %v2270_v49, %v5434_v13  ;;  %v4433_v51 = vpop.f32.mrb[25].mxu0 }
 0x7e2   : > { %v2273_v52 = vpop.f32.mrb[26].mxu0 }
 0x7e3   : > { %v2277_v54 = vmax.f32 %v4645_v50, 0.0  ;;  %v4434_v55 = vpop.f32.mrb[27].mxu0 }
 0x7e5   : > { %v2278_v57 = vpack.c.bf16 %v2277_v54, %v2277_v54  ;;  %v2999_v54 = vsel %vm392_vm1, %v2997_v42, 0 }
 0x7e7   : > { %2370 = vrot.lane.b32.xlu1 %v2278_v57, %s5141_s30  ;;  %2324 = vrot.lane.b32.xlu0 %v2278_v57, %s5140_s29  ;;  %v2280_v2 = vsel %vm542_vm3, %v2278_v57, 0 }
 0x7eb   : > { %2614 = vrot.lane.b32.xlu0 %v2568_v58, %s5140_s29  ;;  %2660 = vrot.lane.b32.xlu1 %v2568_v58, %s5141_s30 }
 0x839   : > { %v2035_v60 = vpop.permute.xlu0 %2034  ;;  %v2081_v63 = vpop.permute.xlu1 %2080 }
 0x83a   : > { %v2037_v62 = vsel %vm542_vm3, %v2035_v60, 0  ;;  %v2083_v1 = vsel %vm542_vm3, %v2081_v63, 0 }
 0x83b   : > { %4406 = vmatpush3.bf16.msra.mxu1 %v2037_v62 }
 0x83c   : > { %4411 = vmatprep.subr.bf16.mxu1 %v5138_v0 }
 0x83e   : > { %4408 = vmatmul.mubr.msk.bf16.vlgmr.msra.gmra.mrb[20].mxu1 %vm538_vm4, %v5510_v59 }
 0x83f   : > { %4412 = vmatpush3.bf16.msra.mxu1 %v2083_v1  ;;  %4413 = vmatprep.mubr.msk.bf16.mxu1 %vm5139_vm0, %v5138_v0 }
 0x840   : > { %4435 = vmatprep.subr.bf16.mxu1 %v5138_v0 }
 0x84a   : > { %4414 = vmatmul.mubr.msk.bf16.vlgmr.msra.gmra.mrb[20].mxu1 %vm538_vm4, %v5522_v61 }
 0x84b   : > { %4436 = vmatpush3.bf16.msra.mxu1 %v2280_v2  ;;  %4437 = vmatprep.mubr.msk.bf16.mxu1 %vm5139_vm0, %v5138_v0 }
 0x84c   : > { %4441 = vmatprep.subr.bf16.mxu1 %v5138_v0 }
 0x852   : > { %4438 = vmatmul.mubr.msk.bf16.vlgmr.msra.gmra.mrb[24].mxu1 %vm538_vm4, %v5441_v24 }
 0x853   : > { %4443 = vmatprep.mubr.msk.bf16.mxu1 %vm5139_vm0, %v5138_v0 }
 0x859   : > { %v2325_v3 = vpop.permute.xlu0 %2324  ;;  %v2371_v6 = vpop.permute.xlu1 %2370 }
 0x85a   : > { %v2327_v5 = vsel %vm542_vm3, %v2325_v3, 0  ;;  %v2373_v7 = vsel %vm542_vm3, %v2371_v6, 0 }
 0x85b   : > { %4442 = vmatpush3.bf16.msra.mxu1 %v2327_v5 }
 0x85c   : > { %4447 = vmatprep.subr.bf16.mxu1 %v5138_v0 }
 0x85d   : > { %v2615_v10 = vpop.permute.xlu0 %2614  ;;  %v2661_v15 = vpop.permute.xlu1 %2660 }
 0x85e   : > { %4444 = vmatmul.mubr.msk.bf16.vlgmr.msra.gmra.mrb[24].mxu1 %vm538_vm4, %v5451_v29  ;;  %v2617_v14 = vsel %vm392_vm1, %v2615_v10, 0  ;;  %v2663_v16 = vsel %vm392_vm1, %v2661_v15, 0 }
 0x85f   : > { %4448 = vmatpush3.bf16.msra.mxu1 %v2373_v7  ;;  %4449 = vmatprep.mubr.msk.bf16.mxu1 %vm5139_vm0, %v5138_v0 }
 0x860   : > { %4471 = vmatprep.subr.bf16.mxu1 %v5138_v0 }
 0x86a   : > { %4450 = vmatmul.mubr.msk.bf16.vlgmr.msra.gmra.mrb[24].mxu1 %vm538_vm4, %v5460_v31 }
 0x86b   : > { %4472 = vmatpush3.bf16.msra.mxu1 %v2570_v8  ;;  %4473 = vmatprep.mubr.msk.bf16.mxu1 %vm5139_vm0, %v5138_v0 }
 0x86c   : > { %4477 = vmatprep.subr.bf16.mxu1 %v5138_v0 }
 0x872   : > { %4474 = vmatmul.mubr.msk.bf16.vlgmr.msra.gmra.mrb[28].mxu1 %vm388_vm2, %v5410_v4 }
 0x873   : > { %4478 = vmatpush3.bf16.msra.mxu1 %v2617_v14  ;;  %4479 = vmatprep.mubr.msk.bf16.mxu1 %vm5139_vm0, %v5138_v0 }
 0x874   : > { %4483 = vmatprep.subr.bf16.mxu1 %v5138_v0 }
 0x87e   : > { %4480 = vmatmul.mubr.msk.bf16.vlgmr.msra.gmra.mrb[28].mxu1 %vm388_vm2, %v5419_v9 }
 0x87f   : > { %4484 = vmatpush3.bf16.msra.mxu1 %v2663_v16  ;;  %4485 = vmatprep.mubr.msk.bf16.mxu1 %vm5139_vm0, %v5138_v0 }
 0x880   : > { %4507 = vmatprep.subr.bf16.mxu1 %v5138_v0 }
 0x88a   : > { %4486 = vmatmul.mubr.msk.bf16.vlgmr.msra.gmra.mrb[28].mxu1 %vm388_vm2, %v5428_v12 }
 0x88b   : > { %4509 = vmatprep.mubr.msk.bf16.mxu1 %vm5139_vm0, %v5138_v0 }
 0x91d   : > { %v5759_v17 = vpop.f32.mrb[20].mxu1 }
 0x91e   : > { %v4415_v18 = vpop.f32.mrb[21].mxu1 }
 0x91f   : > { %v2122_v19 = vpop.f32.mrb[22].mxu1 }
 0x920   : > { %v4416_v20 = vpop.f32.mrb[23].mxu1  ;;  %v4044_v19 = vld [vmem:[%s5387_s23 + $0x1c] sm:$0xf] }
 0x93d   : > { %v2409_v21 = vpop.f32.mrb[24].mxu1 }
 0x93e   : > { %v4646_v22 = vadd.f32 %v2409_v21, %v5484_v37  ;;  %v4451_v23 = vpop.f32.mrb[25].mxu1  ;;  %v3426_v21 = vpack.c.bf16 %v4044_v19, %v4044_v19 }
 0x93f   : > { %v2412_v25 = vpop.f32.mrb[26].mxu1 }
 0x940   : > { %v2416_v26 = vmax.f32 %v4646_v22, 0.0  ;;  %v4452_v27 = vpop.f32.mrb[27].mxu1 }
 0x942   : > { %v2417_v28 = vpack.c.bf16 %v2416_v26, %v2416_v26 }
 0x944   : > { %2509 = vrot.lane.b32.xlu1 %v2417_v28, %s5141_s30  ;;  %2463 = vrot.lane.b32.xlu0 %v2417_v28, %s5140_s29  ;;  %v2419_v30 = vsel %vm542_vm3, %v2417_v28, 0 }
 0x945   : > { %4454 = vmatpush3.bf16.msra.mxu0 %v2419_v30 }
 0x946   : > { %4459 = vmatprep.subr.bf16.mxu0 %v5138_v0 }
 0x948   : > { %4456 = vmatmul.mubr.msk.bf16.vlgmr.msra.gmra.mrb[28].mxu0 %vm538_vm4, %v5493_v46 }
 0x949   : > { %4461 = vmatprep.mubr.msk.bf16.mxu0 %vm5139_vm0, %v5138_v0 }
 0x95d   : > { %v2699_v32 = vpop.f32.mrb[28].mxu1 }
 0x95e   : > { %v4648_v33 = vadd.f32 %v2699_v32, %v5434_v13  ;;  %v4487_v34 = vpop.f32.mrb[29].mxu1 }
 0x95f   : > { %v2702_v36 = vpop.f32.mrb[30].mxu1 }
 0x960   : > { %v2706_v38 = vmax.f32 %v4648_v33, 0.0  ;;  %v4488_v39 = vpop.f32.mrb[31].mxu1  ;;  %v4938_v36 = vld [vmem:[#allocation4] sm:$0xf] }
 0x961   : > { %v4939_v39 = vld [vmem:[#allocation4 + $0x4] sm:$0xf] }
 0x962   : > { %v2707_v41 = vpack.c.bf16 %v2706_v38, %v2706_v38 }
 0x964   : > { %2799 = vrot.lane.b32.xlu1 %v2707_v41, %s5141_s30  ;;  %2753 = vrot.lane.b32.xlu0 %v2707_v41, %s5140_s29  ;;  %v2709_v48 = vsel %vm542_vm3, %v2707_v41, 0 }
 0x968   : > { %3043 = vrot.lane.b32.xlu0 %v2997_v42, %s5140_s29  ;;  %3089 = vrot.lane.b32.xlu1 %v2997_v42, %s5141_s30 }
 0x9b6   : > { %v2464_v43 = vpop.permute.xlu0 %2463  ;;  %v2510_v45 = vpop.permute.xlu1 %2509 }
 0x9b7   : > { %v2466_v44 = vsel %vm542_vm3, %v2464_v43, 0  ;;  %v2512_v47 = vsel %vm542_vm3, %v2510_v45, 0 }
 0x9b8   : > { %4460 = vmatpush3.bf16.msra.mxu0 %v2466_v44 }
 0x9b9   : > { %4465 = vmatprep.subr.bf16.mxu0 %v5138_v0 }
 0x9bb   : > { %4462 = vmatmul.mubr.msk.bf16.vlgmr.msra.gmra.mrb[28].mxu0 %vm538_vm4, %v5510_v59 }
 0x9bc   : > { %4466 = vmatpush3.bf16.msra.mxu0 %v2512_v47  ;;  %4467 = vmatprep.mubr.msk.bf16.mxu0 %vm5139_vm0, %v5138_v0 }
 0x9bd   : > { %4489 = vmatprep.subr.bf16.mxu0 %v5138_v0 }
 0x9c7   : > { %4468 = vmatmul.mubr.msk.bf16.vlgmr.msra.gmra.mrb[28].mxu0 %vm538_vm4, %v5522_v61 }
 0x9c8   : > { %4490 = vmatpush3.bf16.msra.mxu0 %v2709_v48  ;;  %4491 = vmatprep.mubr.msk.bf16.mxu0 %vm5139_vm0, %v5138_v0 }
 0x9c9   : > { %4495 = vmatprep.subr.bf16.mxu0 %v5138_v0 }
 0x9cf   : > { %4492 = vmatmul.mubr.msk.bf16.vlgmr.msra.gmra.mrb[32].mxu0 %vm538_vm4, %v5441_v24 }
 0x9d0   : > { %4497 = vmatprep.mubr.msk.bf16.mxu0 %vm5139_vm0, %v5138_v0 }
 0x9d6   : > { %v2754_v49 = vpop.permute.xlu0 %2753  ;;  %v2800_v51 = vpop.permute.xlu1 %2799 }
 0x9d7   : > { %v2756_v50 = vsel %vm542_vm3, %v2754_v49, 0  ;;  %v2802_v52 = vsel %vm542_vm3, %v2800_v51, 0 }
 0x9d8   : > { %4496 = vmatpush3.bf16.msra.mxu0 %v2756_v50 }
 0x9d9   : > { %4501 = vmatprep.subr.bf16.mxu0 %v5138_v0 }
 0x9da   : > { %v3044_v55 = vpop.permute.xlu0 %3043  ;;  %v3090_v57 = vpop.permute.xlu1 %3089 }
 0x9db   : > { %4498 = vmatmul.mubr.msk.bf16.vlgmr.msra.gmra.mrb[32].mxu0 %vm538_vm4, %v5451_v29  ;;  %v3046_v56 = vsel %vm392_vm1, %v3044_v55, 0  ;;  %v3092_v58 = vsel %vm392_vm1, %v3090_v57, 0 }
 0x9dc   : > { %4502 = vmatpush3.bf16.msra.mxu0 %v2802_v52  ;;  %4503 = vmatprep.mubr.msk.bf16.mxu0 %vm5139_vm0, %v5138_v0 }
 0x9dd   : > { %4525 = vmatprep.subr.bf16.mxu0 %v5138_v0 }
 0x9e7   : > { %4504 = vmatmul.mubr.msk.bf16.vlgmr.msra.gmra.mrb[32].mxu0 %vm538_vm4, %v5460_v31 }
 0x9e8   : > { %4526 = vmatpush3.bf16.msra.mxu0 %v2999_v54  ;;  %4527 = vmatprep.mubr.msk.bf16.mxu0 %vm5139_vm0, %v5138_v0 }
 0x9e9   : > { %4531 = vmatprep.subr.bf16.mxu0 %v5138_v0 }
 0x9ef   : > { %4528 = vmatmul.mubr.msk.bf16.vlgmr.msra.gmra.mrb[36].mxu0 %vm388_vm2, %v5410_v4 }
 0x9f0   : > { %4532 = vmatpush3.bf16.msra.mxu0 %v3046_v56  ;;  %4533 = vmatprep.mubr.msk.bf16.mxu0 %vm5139_vm0, %v5138_v0 }
 0x9f1   : > { %4537 = vmatprep.subr.bf16.mxu0 %v5138_v0 }
 0x9fb   : > { %4534 = vmatmul.mubr.msk.bf16.vlgmr.msra.gmra.mrb[36].mxu0 %vm388_vm2, %v5419_v9 }
 0x9fc   : > { %4538 = vmatpush3.bf16.msra.mxu0 %v3092_v58  ;;  %4539 = vmatprep.mubr.msk.bf16.mxu0 %vm5139_vm0, %v5138_v0 }
 0x9fd   : > { %4561 = vmatprep.subr.bf16.mxu0 %v5138_v0 }
 0xa07   : > { %4540 = vmatmul.mubr.msk.bf16.vlgmr.msra.gmra.mrb[36].mxu0 %vm388_vm2, %v5428_v12 }
 0xa08   : > { %4563 = vmatprep.mubr.msk.bf16.mxu0 %vm5139_vm0, %v5138_v0 }
 0xa9a   : > { %v5824_v4 = vpop.f32.mrb[28].mxu0 }
 0xa9b   : > { %v4469_v60 = vpop.f32.mrb[29].mxu0 }
 0xa9c   : > { %v2551_v62 = vpop.f32.mrb[30].mxu0 }
 0xa9d   : > { %v4470_v63 = vpop.f32.mrb[31].mxu0 }
 0xaba   : > { %v2838_v1 = vpop.f32.mrb[32].mxu0 }
 0xabb   : > { %v4649_v9 = vadd.f32 %v2838_v1, %v5484_v37  ;;  %v4505_v2 = vpop.f32.mrb[33].mxu0 }
 0xabc   : > { %v2841_v3 = vpop.f32.mrb[34].mxu0 }
 0xabd   : > { %v2845_v5 = vmax.f32 %v4649_v9, 0.0  ;;  %v4506_v6 = vpop.f32.mrb[35].mxu0  ;;  %v4941_v3 = vld [vmem:[#allocation7] sm:$0xf] }
 0xabf   : > { %v2846_v7 = vpack.c.bf16 %v2845_v5, %v2845_v5 }
 0xac1   : > { %2938 = vrot.lane.b32.xlu1 %v2846_v7, %s5141_s30  ;;  %2892 = vrot.lane.b32.xlu0 %v2846_v7, %s5140_s29  ;;  %v2848_v12 = vsel %vm542_vm3, %v2846_v7, 0 }
 0xac2   : > { %4508 = vmatpush3.bf16.msra.mxu1 %v2848_v12 }
 0xac3   : > { %4513 = vmatprep.subr.bf16.mxu1 %v5138_v0 }
 0xac5   : > { %4510 = vmatmul.mubr.msk.bf16.vlgmr.msra.gmra.mrb[32].mxu1 %vm538_vm4, %v5493_v46 }
 0xac6   : > { %4515 = vmatprep.mubr.msk.bf16.mxu1 %vm5139_vm0, %v5138_v0 }
 0xada   : > { %v3128_v8 = vpop.f32.mrb[36].mxu0 }
 0xadb   : > { %v4651_v10 = vadd.f32 %v3128_v8, %v5434_v13  ;;  %v4541_v14 = vpop.f32.mrb[37].mxu0  ;;  %v4942_v8 = vld [vmem:[#allocation7 + $0x4] sm:$0xf] }
 0xadc   : > { %v3131_v15 = vpop.f32.mrb[38].mxu0 }
 0xadd   : > { %v3135_v16 = vmax.f32 %v4651_v10, 0.0  ;;  %v4542_v18 = vpop.f32.mrb[39].mxu0  ;;  %v4943_v10 = vld [vmem:[#allocation7 + $0x8] sm:$0xf] }
 0xadf   : > { %v3136_v20 = vpack.c.bf16 %v3135_v16, %v3135_v16 }
 0xae1   : > { %3228 = vrot.lane.b32.xlu1 %v3136_v20, %s5141_s30  ;;  %3182 = vrot.lane.b32.xlu0 %v3136_v20, %s5140_s29  ;;  %v3138_v27 = vsel %vm542_vm3, %v3136_v20, 0 }
 0xae5   : > { %3472 = vrot.lane.b32.xlu0 %v3426_v21, %s5140_s29  ;;  %3518 = vrot.lane.b32.xlu1 %v3426_v21, %s5141_s30 }
 0xb33   : > { %v2893_v22 = vpop.permute.xlu0 %2892  ;;  %v2939_v25 = vpop.permute.xlu1 %2938 }
 0xb34   : > { %v2895_v23 = vsel %vm542_vm3, %v2893_v22, 0  ;;  %v2941_v26 = vsel %vm542_vm3, %v2939_v25, 0 }
 0xb35   : > { %4514 = vmatpush3.bf16.msra.mxu1 %v2895_v23 }
 0xb36   : > { %4519 = vmatprep.subr.bf16.mxu1 %v5138_v0 }
 0xb38   : > { %4516 = vmatmul.mubr.msk.bf16.vlgmr.msra.gmra.mrb[32].mxu1 %vm538_vm4, %v5510_v59 }
 0xb39   : > { %4520 = vmatpush3.bf16.msra.mxu1 %v2941_v26  ;;  %4521 = vmatprep.mubr.msk.bf16.mxu1 %vm5139_vm0, %v5138_v0 }
 0xb3a   : > { %4543 = vmatprep.subr.bf16.mxu1 %v5138_v0 }
 0xb44   : > { %4522 = vmatmul.mubr.msk.bf16.vlgmr.msra.gmra.mrb[32].mxu1 %vm538_vm4, %v5522_v61 }
 0xb45   : > { %4544 = vmatpush3.bf16.msra.mxu1 %v3138_v27  ;;  %4545 = vmatprep.mubr.msk.bf16.mxu1 %vm5139_vm0, %v5138_v0 }
 0xb46   : > { %4549 = vmatprep.subr.bf16.mxu1 %v5138_v0 }
 0xb4c   : > { %4546 = vmatmul.mubr.msk.bf16.vlgmr.msra.gmra.mrb[36].mxu1 %vm538_vm4, %v5441_v24  ;;  %v3428_v24 = vsel %vm392_vm1, %v3426_v21, 0 }
 0xb4d   : > { %4551 = vmatprep.mubr.msk.bf16.mxu1 %vm5139_vm0, %v5138_v0 }
 0xb53   : > { %v3183_v28 = vpop.permute.xlu0 %3182  ;;  %v3229_v32 = vpop.permute.xlu1 %3228 }
 0xb54   : > { %v3185_v30 = vsel %vm542_vm3, %v3183_v28, 0  ;;  %v3231_v33 = vsel %vm542_vm3, %v3229_v32, 0  ;;  %v380_v28 = vld [vmem:[%s6003_s6] sm:$0x3f] }
 0xb55   : > { %4550 = vmatpush3.bf16.msra.mxu1 %v3185_v30 }
 0xb56   : > { %4555 = vmatprep.subr.bf16.mxu1 %v5138_v0 }
 0xb57   : > { %v3473_v34 = vpop.permute.xlu0 %3472  ;;  %v3519_v38 = vpop.permute.xlu1 %3518 }
 0xb58   : > { %4552 = vmatmul.mubr.msk.bf16.vlgmr.msra.gmra.mrb[36].mxu1 %vm538_vm4, %v5451_v29  ;;  %v3475_v29 = vsel %vm392_vm1, %v3473_v34, 0 }
 0xb59   : > { %4556 = vmatpush3.bf16.msra.mxu1 %v3231_v33  ;;  %4557 = vmatprep.mubr.msk.bf16.mxu1 %vm5139_vm0, %v5138_v0 }
 0xb5a   : > { %4579 = vmatprep.subr.bf16.mxu1 %v5138_v0 }
 0xb64   : > { %4558 = vmatmul.mubr.msk.bf16.vlgmr.msra.gmra.mrb[36].mxu1 %vm538_vm4, %v5460_v31  ;;  %v3521_v31 = vsel %vm392_vm1, %v3519_v38, 0 }
 0xb65   : > { %4580 = vmatpush3.bf16.msra.mxu1 %v3428_v24  ;;  %4581 = vmatprep.mubr.msk.bf16.mxu1 %vm5139_vm0, %v5138_v0 }
 0xb66   : > { %4585 = vmatprep.subr.bf16.mxu1 %v5138_v0 }
 0xb6c   : > { %4582 = vmatmul.mubr.msk.bf16.vlgmr.msra.gmra.mrb[40].mxu1 %vm388_vm2, %v4938_v36 }
 0xb6d   : > { %4586 = vmatpush3.bf16.msra.mxu1 %v3475_v29  ;;  %4587 = vmatprep.mubr.msk.bf16.mxu1 %vm5139_vm0, %v5138_v0 }
 0xb6e   : > { %4591 = vmatprep.subr.bf16.mxu1 %v5138_v0 }
 0xb78   : > { %4588 = vmatmul.mubr.msk.bf16.vlgmr.msra.gmra.mrb[40].mxu1 %vm388_vm2, %v4939_v39 }
 0xb79   : > { %4592 = vmatpush3.bf16.msra.mxu1 %v3521_v31  ;;  %4593 = vmatprep.mubr.msk.bf16.mxu1 %vm5139_vm0, %v5138_v0 }
 0xb7a   : > { %4615 = vmatprep.subr.bf16.mxu1 %v5138_v0 }
 0xb84   : > { %4594 = vmatmul.mubr.msk.bf16.vlgmr.msra.gmra.mrb[40].mxu1 %vm388_vm2, %v4940_v40 }
 0xb85   : > { %4617 = vmatprep.mubr.msk.bf16.mxu1 %vm5139_vm0, %v5138_v0 }
 0xc17   : > { %v5886_v41 = vpop.f32.mrb[32].mxu1 }
 0xc18   : > { %v4523_v42 = vpop.f32.mrb[33].mxu1 }
 0xc19   : > { %v2980_v43 = vpop.f32.mrb[34].mxu1 }
 0xc1a   : > { %v4524_v44 = vpop.f32.mrb[35].mxu1  ;;  %v841_v43 = vlaneseq }
 0xc1c   : > { %v842_v44 = vand.u32 127, %v841_v43 }
 0xc37   : > { %v3267_v45 = vpop.f32.mrb[36].mxu1 }
 0xc38   : > { %v4652_v47 = vadd.f32 %v3267_v45, %v5484_v37  ;;  %v4559_v48 = vpop.f32.mrb[37].mxu1  ;;  %v844_v45 = vshrl.u32 %v841_v43, 7 }
 0xc39   : > { %v3270_v49 = vpop.f32.mrb[38].mxu1 }
 0xc3a   : > { %v3274_v50 = vmax.f32 %v4652_v47, 0.0  ;;  %v4560_v51 = vpop.f32.mrb[39].mxu1 }
 0xc3c   : > { %v3275_v52 = vpack.c.bf16 %v3274_v50, %v3274_v50 }
 0xc3e   : > { %3367 = vrot.lane.b32.xlu1 %v3275_v52, %s5141_s30  ;;  %3321 = vrot.lane.b32.xlu0 %v3275_v52, %s5140_s29  ;;  %v3277_v54 = vsel %vm542_vm3, %v3275_v52, 0 }
 0xc3f   : > { %4562 = vmatpush3.bf16.msra.mxu0 %v3277_v54 }
 0xc40   : > { %4567 = vmatprep.subr.bf16.mxu0 %v5138_v0 }
 0xc42   : > { %4564 = vmatmul.mubr.msk.bf16.vlgmr.msra.gmra.mrb[40].mxu0 %vm538_vm4, %v5493_v46 }
 0xc43   : > { %4569 = vmatprep.mubr.msk.bf16.mxu0 %vm5139_vm0, %v5138_v0 }
 0xc57   : > { %v3557_v55 = vpop.f32.mrb[40].mxu1 }
 0xc58   : > { %v4654_v56 = vadd.f32 %v3557_v55, %v5434_v13  ;;  %v4595_v57 = vpop.f32.mrb[41].mxu1 }
 0xc59   : > { %v3560_v58 = vpop.f32.mrb[42].mxu1 }
 0xc5a   : > { %v3564_v60 = vmax.f32 %v4654_v56, 0.0  ;;  %v4596_v62 = vpop.f32.mrb[43].mxu1 }
 0xc5c   : > { %v3565_v63 = vpack.c.bf16 %v3564_v60, %v3564_v60 }
 0xc5e   : > { %3657 = vrot.lane.b32.xlu1 %v3565_v63, %s5141_s30  ;;  %3611 = vrot.lane.b32.xlu0 %v3565_v63, %s5140_s29  ;;  %v3567_v13 = vsel %vm542_vm3, %v3565_v63, 0 }
 0xcb0   : > { %v3322_v1 = vpop.permute.xlu0 %3321  ;;  %v3368_v2 = vpop.permute.xlu1 %3367 }
 0xcb1   : > { %v3324_v9 = vsel %vm542_vm3, %v3322_v1, 0  ;;  %v3370_v46 = vsel %vm542_vm3, %v3368_v2, 0 }
 0xcb2   : > { %4568 = vmatpush3.bf16.msra.mxu0 %v3324_v9 }
 0xcb3   : > { %4573 = vmatprep.subr.bf16.mxu0 %v5138_v0 }
 0xcb5   : > { %4570 = vmatmul.mubr.msk.bf16.vlgmr.msra.gmra.mrb[40].mxu0 %vm538_vm4, %v5510_v59 }
 0xcb6   : > { %4574 = vmatpush3.bf16.msra.mxu0 %v3370_v46  ;;  %4575 = vmatprep.mubr.msk.bf16.mxu0 %vm5139_vm0, %v5138_v0 }
 0xcb7   : > { %4597 = vmatprep.subr.bf16.mxu0 %v5138_v0 }
 0xcc1   : > { %4576 = vmatmul.mubr.msk.bf16.vlgmr.msra.gmra.mrb[40].mxu0 %vm538_vm4, %v5522_v61 }
 0xcc2   : > { %4598 = vmatpush3.bf16.msra.mxu0 %v3567_v13  ;;  %4599 = vmatprep.mubr.msk.bf16.mxu0 %vm5139_vm0, %v5138_v0 }
 0xcc3   : > { %4603 = vmatprep.subr.bf16.mxu0 %v5138_v0 }
 0xcc9   : > { %4600 = vmatmul.mubr.msk.bf16.vlgmr.msra.gmra.mrb[44].mxu0 %vm538_vm4, %v4941_v3 }
 0xcca   : > { %4605 = vmatprep.mubr.msk.bf16.mxu0 %vm5139_vm0, %v5138_v0 }
 0xcd0   : > { %v3612_v5 = vpop.permute.xlu0 %3611  ;;  %v3658_v7 = vpop.permute.xlu1 %3657 }
 0xcd1   : > { %v3614_v6 = vsel %vm542_vm3, %v3612_v5, 0  ;;  %v3660_v12 = vsel %vm542_vm3, %v3658_v7, 0 }
 0xcd2   : > { %4604 = vmatpush3.bf16.msra.mxu0 %v3614_v6 }
 0xcd3   : > { %4609 = vmatprep.subr.bf16.mxu0 %v5138_v0 }
 0xcd5   : > { %4606 = vmatmul.mubr.msk.bf16.vlgmr.msra.gmra.mrb[44].mxu0 %vm538_vm4, %v4942_v8 }
 0xcd6   : > { %4610 = vmatpush3.bf16.msra.mxu0 %v3660_v12  ;;  %4611 = vmatprep.mubr.msk.bf16.mxu0 %vm5139_vm0, %v5138_v0 }
 0xce1   : > { %4612 = vmatmul.mubr.msk.bf16.vlgmr.msra.gmra.mrb[44].mxu0 %vm538_vm4, %v4943_v10 }
 0xd94   : > { %v3406_v14 = vpop.f32.mrb[40].mxu0 }
 0xd95   : > { %v4577_v15 = vpop.f32.mrb[41].mxu0 }
 0xd96   : > { %v3409_v16 = vpop.f32.mrb[42].mxu0 }
 0xd97   : > { %v4578_v18 = vpop.f32.mrb[43].mxu0 }
 0xdb4   : > { %v3696_v19 = vpop.f32.mrb[44].mxu0 }
 0xdb5   : > { %v4655_v20 = vadd.f32 %v3696_v19, %v5484_v37  ;;  %v4613_v21 = vpop.f32.mrb[45].mxu0  ;;  %v4944_v37 = vld [vmem:[%s6002_s5] sm:$0x7] }
 0xdb6   : > { %v3699_v22 = vpop.f32.mrb[46].mxu0 }
 0xdb7   : > { %v3703_v23 = vmax.f32 %v4655_v20, 0.0  ;;  %v4614_v25 = vpop.f32.mrb[47].mxu0 }
 0xdb9   : > { %v3704_v26 = vpack.c.bf16 %v3703_v23, %v3703_v23 }
 0xdbb   : > { %3796 = vrot.lane.b32.xlu1 %v3704_v26, %s5141_s30  ;;  %3750 = vrot.lane.b32.xlu0 %v3704_v26, %s5140_s29  ;;  %v3706_v27 = vsel %vm542_vm3, %v3704_v26, 0 }
 0xdbc   : > { %4616 = vmatpush3.bf16.msra.mxu1 %v3706_v27 }
 0xdbd   : > { %4621 = vmatprep.subr.bf16.mxu1 %v5138_v0 }
 0xdbf   : > { %383 = vperm.xlu0 %4937, %v380_v28   ;;  %4618 = vmatmul.mubr.msk.bf16.vlgmr.msra.gmra.mrb[44].mxu1 %vm538_vm4, %v4944_v37 }
 0xdc0   : > { %4623 = vmatprep.mubr.msk.bf16.mxu1 %vm5139_vm0, %v5138_v0 }
 0xe2d   : > { %v3751_v30 = vpop.permute.xlu0 %3750  ;;  %v3797_v33 = vpop.permute.xlu1 %3796 }
 0xe2e   : > { %v3753_v32 = vsel %vm542_vm3, %v3751_v30, 0  ;;  %v3799_v24 = vsel %vm542_vm3, %v3797_v33, 0 }
 0xe2f   : > { %4622 = vmatpush3.bf16.msra.mxu1 %v3753_v32 }
 0xe30   : > { %4627 = vmatprep.subr.bf16.mxu1 %v5138_v0 }
 0xe32   : > { %4624 = vmatmul.mubr.msk.bf16.vlgmr.msra.gmra.mrb[44].mxu1 %vm538_vm4, %v5510_v59 }
 0xe33   : > { %4628 = vmatpush3.bf16.msra.mxu1 %v3799_v24  ;;  %4629 = vmatprep.mubr.msk.bf16.mxu1 %vm5139_vm0, %v5138_v0 }
 0xe3e   : > { %v384_v34 = vpop.permute.xlu0 %383  ;;  %4630 = vmatmul.mubr.msk.bf16.vlgmr.msra.gmra.mrb[44].mxu1 %vm538_vm4, %v5522_v61 }
 0xe3f   : > { %v4638_v29 = vadd.f32 %v5629_v53, %v384_v34  ;;  %v4635_v36 = vadd.f32 %v5564_v11, %v384_v34  ;;  %v4644_v39 = vadd.f32 %v5759_v17, %v384_v34  ;;  %v4641_v59 = vadd.f32 %v5694_v35, %v384_v34 }
 0xe40   : > { %v4650_v53 = vadd.f32 %v5886_v41, %v384_v34  ;;  %v4647_v11 = vadd.f32 %v5824_v4, %v384_v34  ;;  %v4653_v42 = vadd.f32 %v3406_v14, %v384_v34  ;;  %v845_v41 = vsub.s32 %v842_v44, %v844_v45 }
 0xe41   : > { %v1268_v38 = vsel %vm834_vm5, %v4638_v29, 0.0  ;;  %v835_v31 = vsel %vm834_vm5, %v4635_v36, 0.0  ;;  %v2126_v0 = vsel %vm834_vm5, %v4644_v39, 0.0  ;;  %v1697_v61 = vsel %vm834_vm5, %v4641_v59, 0.0 }
 0xe42   : > { %1269 = vadd.xlane.f32.xlu0 %v1268_v38  ;;  %836 = vadd.xlane.f32.xlu1 %v835_v31  ;;  %v2984_v40 = vsel %vm834_vm5, %v4650_v53, 0.0  ;;  %v2555_v17 = vsel %vm834_vm5, %v4647_v11, 0.0  ;;  %v3413_v35 = vsel %vm834_vm5, %v4653_v42, 0.0 }
 0xe46   : > { %2127 = vadd.xlane.f32.xlu0 %v2126_v0  ;;  %1698 = vadd.xlane.f32.xlu1 %v1697_v61 }
 0xe4a   : > { %2985 = vadd.xlane.f32.xlu0 %v2984_v40  ;;  %2556 = vadd.xlane.f32.xlu1 %v2555_v17 }
 0xe4e   : > { %3414 = vadd.xlane.f32.xlu1 %v3413_v35 }
 0xecf   : > { %v1270_v4 = vpop.xlane.xlu0 %1269  ;;  %v837_v47 = vpop.xlane.xlu1 %836 }
 0xed0   : > { %v1271_v48 = vmul.f32 0.1, %v1270_v4  ;;  %v839_v49 = vmul.f32 0.1, %v837_v47 }
 0xed2   : > { %v1276_v50 = vrot.slane %v1271_v48, %v845_v41  ;;  %v846_v51 = vrot.slane %v839_v49, %v845_v41 }
 0xed3   : > { %v2128_v52 = vpop.xlane.xlu0 %2127  ;;  %v1699_v54 = vpop.xlane.xlu1 %1698 }
 0xed4   : > { %1278 = vst.msk [vmem:[%s5965_s12 + $0x1] sm:$0x1] %vm848_vm6, %v1276_v50  ;;  %849 = vst.msk [vmem:[%s5965_s12] sm:$0x1] %vm848_vm6, %v846_v51  ;;  %v2129_v55 = vmul.f32 0.1, %v2128_v52 }
 0xed5   : > { %v1700_v56 = vmul.f32 0.1, %v1699_v54 }
 0xed6   : > { %v2134_v57 = vrot.slane %v2129_v55, %v845_v41 }
 0xed7   : > { %v1705_v58 = vrot.slane %v1700_v56, %v845_v41  ;;  %v2986_v60 = vpop.xlane.xlu0 %2985  ;;  %v2557_v62 = vpop.xlane.xlu1 %2556 }
 0xed8   : > { %2136 = vst.msk [vmem:[%s5965_s12 + $0x3] sm:$0x1] %vm848_vm6, %v2134_v57  ;;  %v2987_v63 = vmul.f32 0.1, %v2986_v60  ;;  %v2558_v1 = vmul.f32 0.1, %v2557_v62 }
 0xed9   : > { %1707 = vst.msk [vmem:[%s5965_s12 + $0x2] sm:$0x1] %vm848_vm6, %v1705_v58 }
 0xeda   : > { %v2992_v9 = vrot.slane %v2987_v63, %v845_v41  ;;  %v2563_v2 = vrot.slane %v2558_v1, %v845_v41 }
 0xedb   : > { %v3415_v46 = vpop.xlane.xlu1 %3414 }
 0xedc   : > { %2994 = vst.msk [vmem:[%s5965_s12 + $0x5] sm:$0x1] %vm848_vm6, %v2992_v9  ;;  %2565 = vst.msk [vmem:[%s5965_s12 + $0x4] sm:$0x1] %vm848_vm6, %v2563_v2  ;;  %v3416_v13 = vmul.f32 0.1, %v3415_v46 }
 0xede   : > { %v3421_v3 = vrot.slane %v3416_v13, %v845_v41 }
 0xee0   : > { %3423 = vst.msk [vmem:[%s5965_s12 + $0x6] sm:$0x1] %vm848_vm6, %v3421_v3 }
 0xf11   : > { %v3835_v5 = vpop.f32.mrb[44].mxu1 }
 0xf12   : > { %v4656_v6 = vadd.f32 %v3835_v5, %v384_v34  ;;  %v4631_v7 = vpop.f32.mrb[45].mxu1 }
 0xf13   : > { %v3838_v12 = vpop.f32.mrb[46].mxu1 }
 0xf14   : > { %v4632_v8 = vpop.f32.mrb[47].mxu1  ;;  %v3842_v10 = vsel %vm834_vm5, %v4656_v6, 0.0 }
 0xf15   : > { %3843 = vadd.xlane.f32.xlu0 %v3842_v10 }
 0xfa2   : > { %v3844_v14 = vpop.xlane.xlu0 %3843 }
 0xfa3   : > { %v3845_v15 = vmul.f32 0.1, %v3844_v14 }
 0xfa5   : > { %v3850_v16 = vrot.slane %v3845_v15, %v845_v41 }
 0xfa7   : > { %3852 = vst.msk [vmem:[%s5965_s12 + $0x7] sm:$0x1] %vm848_vm6, %v3850_v16 }
 0xfa8 PF: > { %p19_p4 = scmp.ge.s32.totalorder %s5328_s20, 4   ;;  %s6019_s24 = smov %s5121_s25 }
 0xfa9   : > { %s6020_s25 = smov %s5125_s26  ;;  %s6021_s26 = smov %s5339_s13 }
 0xfaa   : > { %s6022_s27 = smov %s5328_s20  ;;  %21 = sbr.rel (!%p19_p4) target bundleno = 5 (0x5), region = 117 }
 0xfb1   :  { %3872 = vsyncpa [#allocation3], 1 }
 0xfb2   :  { %3874 = vsyncpa [#allocation3 + $0x1], 1 }
 0xfb3   :  { %3875 = vsyncpa [#allocation5], 1 }
 0xfb4   :  { %3876 = vsyncpa [#allocation8], 1 }

</bundles_post_ra>
